<compile_context>
chip_gen: v7x
topology: tpu7x:2x2x1
jax: 0.10.0
libtpu: 0.0.40
codegen_flags: <defaults>
</compile_context>

<pallas_src>
import jax
import jax.numpy as jnp
from jax.experimental import pallas as pl
from jax.experimental.pallas import tpu as pltpu

SCALE = 1.0 / (2.0 ** 0.5)


def _round_up(x, m):
    return ((x + m - 1) // m) * m


# ---------------------------------------------------------------------------
# Fused encoder kernel (one grid step per batch element)
# ---------------------------------------------------------------------------
def _make_encoder_kernel(L, L_pad, Lp_pad, k, pad, n_layers, H_p, E_p):
    """All shape parameters are static Python ints captured by closure."""

    def kernel(tok_ref, pos_ref,            # (L_pad, E_p) bf16 each
               we_ref, be_ref,              # (E_p, H_p) bf16, (1, H_p) f32
               wl_ref, bl_ref,              # (n_layers, k*H_p, H_p) bf16, (n_layers, 1, H_p) f32
               wg_ref, bg_ref,              # same shapes as lin
               wo_ref, bo_ref,              # (H_p, E_p) bf16, (1, E_p) f32
               conved_ref, comb_ref,        # (L_pad, E_p) f32 outputs
               x_sc, emb_sc):               # VMEM scratch (Lp_pad, H_p) f32 / (L_pad, E_p) f32
        # --- embeddings: tok + pos (parked in VMEM for the final combine) ----
        emb_f32 = tok_ref[...].astype(jnp.float32) + pos_ref[...].astype(jnp.float32)
        emb_sc[...] = emb_f32
        emb_bf = emb_f32.astype(jnp.bfloat16)

        # --- emb2hid ----------------------------------------------------------
        ci = jnp.dot(emb_bf, we_ref[...],
                     preferred_element_type=jnp.float32) + be_ref[...]      # (L_pad, H_p)

        if L < L_pad:
            # zero out padded rows so they act as the zero conv halo; hoisted
            # full-width f32 mask (one vmul per layer, no per-layer broadcast)
            row_ids = jax.lax.broadcasted_iota(jnp.int32, (L_pad, H_p), 0)
            keep = (row_ids < L).astype(jnp.float32)
            ci = ci * keep

        # activation stored at rows [0, L_pad); rows [L_pad, Lp_pad) stay zero
        if Lp_pad > L_pad:
            x_sc[pl.ds(L_pad, Lp_pad - L_pad), :] = jnp.zeros(
                (Lp_pad - L_pad, H_p), jnp.float32)
        x_sc[pl.ds(0, L_pad), :] = ci

        # --- conv stack: conv1d -> GLU -> residual, all VMEM-resident --------
        for layer in range(n_layers):
            xa = x_sc[...]                                      # (Lp_pad, H_p) f32

            def shifted(dk):
                s = (pad - dk) % Lp_pad
                return xa if s == 0 else pltpu.roll(xa, shift=s, axis=0)

            # tap dk at output position t reads activation row (t + dk - pad);
            # out-of-range rows wrap into the zero tail of the scratch.
            cols = [shifted(dk)[:L_pad, :] for dk in range(k)]
            taps = jnp.concatenate([c.astype(jnp.bfloat16) for c in cols],
                                   axis=-1)                      # (L_pad, k*H_p) bf16

            lin = jnp.dot(taps, wl_ref[layer],
                          preferred_element_type=jnp.float32) + bl_ref[layer]
            gate = jnp.dot(taps, wg_ref[layer],
                           preferred_element_type=jnp.float32) + bg_ref[layer]

            resid = cols[pad]                                   # current activation (f32)
            newx = (lin * jax.nn.sigmoid(gate) + resid) * SCALE
            if L < L_pad:
                newx = newx * keep
            x_sc[pl.ds(0, L_pad), :] = newx                     # aligned sublane store

        # --- hid2emb + combine ------------------------------------------------
        x_fin = x_sc[pl.ds(0, L_pad), :].astype(jnp.bfloat16)
        conved = jnp.dot(x_fin, wo_ref[...],
                         preferred_element_type=jnp.float32) + bo_ref[...]
        conved_ref[...] = conved.astype(conved_ref.dtype)
        comb_ref[...] = ((conved + emb_sc[...]) * SCALE).astype(comb_ref.dtype)

    return kernel


# ---------------------------------------------------------------------------
# Model
# ---------------------------------------------------------------------------
def init_params(key, num_embeddings, emb_dim, hid_dim, n_layers,
                kernel_size=5, max_length=100):
    keys = jax.random.split(key, 6 + 2 * n_layers)
    p = {
        "tok_emb": 0.1 * jax.random.normal(keys[0], (num_embeddings, emb_dim), jnp.float32),
        "pos_emb": 0.1 * jax.random.normal(keys[1], (max_length, emb_dim), jnp.float32),
        # Linear weights stored already transposed: (in, out)
        "w_e2h": 0.1 * jax.random.normal(keys[2], (emb_dim, hid_dim), jnp.float32),
        "b_e2h": 0.1 * jax.random.normal(keys[3], (1, hid_dim), jnp.float32),
        "w_h2e": 0.1 * jax.random.normal(keys[4], (hid_dim, emb_dim), jnp.float32),
        "b_h2e": 0.1 * jax.random.normal(keys[5], (1, emb_dim), jnp.float32),
        "conv_w": [],  # each: (k, hid, 2*hid)  == torch (2H, H, k).transpose(2,1,0)
        "conv_b": [],  # each: (1, 2*hid)
    }
    for i in range(n_layers):
        p["conv_w"].append(
            0.1 * jax.random.normal(keys[6 + 2 * i],
                                    (kernel_size, hid_dim, 2 * hid_dim), jnp.float32))
        p["conv_b"].append(
            0.1 * jax.random.normal(keys[7 + 2 * i], (1, 2 * hid_dim), jnp.float32))
    return p


def _vmem_limit_bytes(L_pad, Lp_pad, E_p, H_p, k, n_layers):
    """Rough per-core VMEM budget: 2x (double-buffered) blocks + scratch + temps."""
    blocks = (
        2 * L_pad * E_p * 2                     # tok, pos (bf16)
        + E_p * H_p * 2 + H_p * E_p * 2         # emb2hid / hid2emb weights (bf16)
        + 2 * n_layers * k * H_p * H_p * 2      # conv W_lin / W_gate (bf16)
        + (2 + 2 * n_layers) * H_p * 4 + E_p * 4  # biases (f32)
        + 2 * L_pad * E_p * 4                   # two f32 outputs
    )
    scratch = Lp_pad * H_p * 4 + L_pad * E_p * 4
    temps = L_pad * k * H_p * 2 + 6 * L_pad * H_p * 4   # taps + a few live activations
    est = 2 * blocks + scratch + temps
    return int(min(max(2 * est, 24 * 2**20), 56 * 2**20))   # cap for v7x's 64 MiB VMEM


def text_conv_encoder(src_inp, params):
    """src_inp: (bs, src_len) int32.  Returns (conved, combined), each (bs, L, emb_dim)."""
    bs, L = src_inp.shape
    E = params["tok_emb"].shape[1]
    H = params["w_e2h"].shape[1]
    n_layers = len(params["conv_w"])
    assert n_layers >= 1
    k = params["conv_w"][0].shape[0]
    assert k % 2 == 1
    assert L <= params["pos_emb"].shape[0], "src_len exceeds max_length"

    pad = (k - 1) // 2
    # lane-dense / sublane-aligned padded sizes
    E_p = _round_up(E, 128)
    H_p = _round_up(H, 128)
    L_pad = _round_up(L, 8)
    Lp_pad = _round_up(L_pad + k - 1, 8)

    bf16 = jnp.bfloat16

    # ---- parameter preprocessing (would be one-time at load in practice) ----
    tok_tbl = jnp.pad(params["tok_emb"], ((0, 0), (0, E_p - E))).astype(bf16)
    pos_p = jnp.pad(params["pos_emb"][:L], ((0, L_pad - L), (0, E_p - E))).astype(bf16)

    w_e2h_p = jnp.pad(params["w_e2h"], ((0, E_p - E), (0, H_p - H))).astype(bf16)
    b_e2h_p = jnp.pad(params["b_e2h"], ((0, 0), (0, H_p - H))).astype(jnp.float32)
    w_h2e_p = jnp.pad(params["w_h2e"], ((0, H_p - H), (0, E_p - E))).astype(bf16)
    b_h2e_p = jnp.pad(params["b_h2e"], ((0, 0), (0, E_p - E))).astype(jnp.float32)

    wl_list, wg_list, bl_list, bg_list = [], [], [], []
    for w, b in zip(params["conv_w"], params["conv_b"]):
        assert w.shape[0] == k
        w_lin = jnp.pad(w[:, :, :H], ((0, 0), (0, H_p - H), (0, H_p - H)))
        w_gate = jnp.pad(w[:, :, H:], ((0, 0), (0, H_p - H), (0, H_p - H)))
        wl_list.append(w_lin.reshape(k * H_p, H_p).astype(bf16))
        wg_list.append(w_gate.reshape(k * H_p, H_p).astype(bf16))
        bl_list.append(jnp.pad(b[:, :H], ((0, 0), (0, H_p - H))).astype(jnp.float32))
        bg_list.append(jnp.pad(b[:, H:], ((0, 0), (0, H_p - H))).astype(jnp.float32))
    w_cl = jnp.stack(wl_list)            # (n_layers, k*H_p, H_p) bf16
    w_cg = jnp.stack(wg_list)
    b_cl = jnp.stack(bl_list)            # (n_layers, 1, H_p) f32
    b_cg = jnp.stack(bg_list)

    # ---- embedding gather (data-dependent -> plain JAX glue) -----------------
    tok_embedded = jnp.take(tok_tbl, src_inp, axis=0)                 # (bs, L, E_p) bf16
    tok_p = jnp.pad(tok_embedded, ((0, 0), (0, L_pad - L), (0, 0)))   # (bs, L_pad, E_p)

    # ---- fused Pallas call ----------------------------------------------------
    kernel = _make_encoder_kernel(L, L_pad, Lp_pad, k, pad, n_layers, H_p, E_p)

    conved_p, comb_p = pl.pallas_call(
        kernel,
        out_shape=(jax.ShapeDtypeStruct((bs, L_pad, E_p), jnp.float32),
                   jax.ShapeDtypeStruct((bs, L_pad, E_p), jnp.float32)),
        grid=(bs,),
        in_specs=[
            pl.BlockSpec((None, L_pad, E_p), lambda b: (b, 0, 0)),          # tok
            pl.BlockSpec((L_pad, E_p), lambda b: (0, 0)),                   # pos
            pl.BlockSpec((E_p, H_p), lambda b: (0, 0)),                     # w_e2h
            pl.BlockSpec((1, H_p), lambda b: (0, 0)),                       # b_e2h
            pl.BlockSpec((n_layers, k * H_p, H_p), lambda b: (0, 0, 0)),    # W_lin
            pl.BlockSpec((n_layers, 1, H_p), lambda b: (0, 0, 0)),          # b_lin
            pl.BlockSpec((n_layers, k * H_p, H_p), lambda b: (0, 0, 0)),    # W_gate
            pl.BlockSpec((n_layers, 1, H_p), lambda b: (0, 0, 0)),          # b_gate
            pl.BlockSpec((H_p, E_p), lambda b: (0, 0)),                     # w_h2e
            pl.BlockSpec((1, E_p), lambda b: (0, 0)),                       # b_h2e
        ],
        out_specs=[
            pl.BlockSpec((None, L_pad, E_p), lambda b: (b, 0, 0)),
            pl.BlockSpec((None, L_pad, E_p), lambda b: (b, 0, 0)),
        ],
        scratch_shapes=[pltpu.VMEM((Lp_pad, H_p), jnp.float32),
                        pltpu.VMEM((L_pad, E_p), jnp.float32)],
        compiler_params=pltpu.CompilerParams(
            dimension_semantics=("parallel",),
            vmem_limit_bytes=_vmem_limit_bytes(L_pad, Lp_pad, E_p, H_p, k, n_layers)),
    )(tok_p, pos_p, w_e2h_p, b_e2h_p, w_cl, b_cl, w_cg, b_cg, w_h2e_p, b_h2e_p)

    conved = conved_p[:, :L, :E]
    combined = comb_p[:, :L, :E]
    return conved, combined


# ---------------------------------------------------------------------------
# Pure-JAX reference (for correctness check)
# ---------------------------------------------------------------------------
def reference(src_inp, params):
    bs, L = src_inp.shape
    tok = jnp.take(params["tok_emb"], src_inp, axis=0)
    pos = jnp.take(params["pos_emb"], jnp.arange(L), axis=0)[None]
    embedded = tok + pos
    x = embedded @ params["w_e2h"] + params["b_e2h"]                     # (bs, L, H)
    H = x.shape[-1]
    for w_kio, b2 in zip(params["conv_w"], params["conv_b"]):
        k = w_kio.shape[0]
        pad = (k - 1) // 2
        xpad = jnp.pad(x, ((0, 0), (pad, pad), (0, 0)))
        taps = jnp.stack([xpad[:, dk:dk + L] for dk in range(k)], axis=2)  # (bs,L,k,H)
        conv = jnp.einsum("btkc,kco->bto", taps, w_kio) + b2               # (bs,L,2H)
        glu = conv[..., :H] * jax.nn.sigmoid(conv[..., H:])
        x = (glu + x) * SCALE
    conved = x @ params["w_h2e"] + params["b_h2e"]
    combined = (conved + embedded) * SCALE
    return conved, combined


# ---------------------------------------------------------------------------
if __name__ == "__main__":
    num_embeddings, emb_dim, hid_dim, n_layers = 50, 32, 32, 2
    kernel_size, max_length = 5, 100
    bs, src_len = 2, 8

    key = jax.random.PRNGKey(0)
    pkey, ikey = jax.random.split(key)
    params = init_params(pkey, num_embeddings, emb_dim, hid_dim, n_layers,
                         kernel_size=kernel_size, max_length=max_length)
    src_inp = jax.random.randint(ikey, (bs, src_len), 0, num_embeddings, dtype=jnp.int32)

    conved, combined = text_conv_encoder(src_inp, params)
    jax.block_until_ready((conved, combined))

    # Reference uses the same bf16-rounded weights so the comparison isolates
    # in-kernel numerics (bf16 matmul inputs, f32 accumulation).
    params_rt = jax.tree_util.tree_map(
        lambda a: a.astype(jnp.bfloat16).astype(jnp.float32), params)
    ref_conved, ref_combined = reference(src_inp, params_rt)

    assert conved.shape == (bs, src_len, emb_dim)
    assert combined.shape == (bs, src_len, emb_dim)
    assert jnp.allclose(conved, ref_conved, atol=2e-2, rtol=2e-2)
    assert jnp.allclose(combined, ref_combined, atol=2e-2, rtol=2e-2)

    print("KERNEL_OK")
</pallas_src>

<mosaic_0001>
module attributes {stable_mosaic.version = 11 : i64} {
  func.func @kernel(%arg0: i32, %arg1: memref<1x8x128xbf16, #tpu.memory_space<vmem>>, %arg2: memref<8x128xbf16, #tpu.memory_space<vmem>>, %arg3: memref<128x128xbf16, #tpu.memory_space<vmem>>, %arg4: memref<1x128xf32, #tpu.memory_space<vmem>>, %arg5: memref<2x640x128xbf16, #tpu.memory_space<vmem>>, %arg6: memref<2x1x128xf32, #tpu.memory_space<vmem>>, %arg7: memref<2x640x128xbf16, #tpu.memory_space<vmem>>, %arg8: memref<2x1x128xf32, #tpu.memory_space<vmem>>, %arg9: memref<128x128xbf16, #tpu.memory_space<vmem>>, %arg10: memref<1x128xf32, #tpu.memory_space<vmem>>, %arg11: memref<1x8x128xf32, #tpu.memory_space<vmem>>, %arg12: memref<1x8x128xf32, #tpu.memory_space<vmem>>, %arg13: memref<16x128xf32, #tpu.memory_space<vmem>>, %arg14: memref<8x128xf32, #tpu.memory_space<vmem>>) attributes {dimension_semantics = [#tpu.dimension_semantics<parallel>], iteration_bounds = array<i64: 2>, scalar_prefetch = 0 : i64, scratch_operands = 2 : i64, tpu.core_type = #tpu.core_type<tc>, window_params = [{transform_indices = @transform_0, window_bounds = array<i64: 1, 8, 128>}, {pipeline_mode = #tpu.pipeline_mode<synchronous>, transform_indices = @transform_1, window_bounds = array<i64: 8, 128>}, {pipeline_mode = #tpu.pipeline_mode<synchronous>, transform_indices = @transform_2, window_bounds = array<i64: 128, 128>}, {pipeline_mode = #tpu.pipeline_mode<synchronous>, transform_indices = @transform_3, window_bounds = array<i64: 1, 128>}, {pipeline_mode = #tpu.pipeline_mode<synchronous>, transform_indices = @transform_4, window_bounds = array<i64: 2, 640, 128>}, {pipeline_mode = #tpu.pipeline_mode<synchronous>, transform_indices = @transform_5, window_bounds = array<i64: 2, 1, 128>}, {pipeline_mode = #tpu.pipeline_mode<synchronous>, transform_indices = @transform_6, window_bounds = array<i64: 2, 640, 128>}, {pipeline_mode = #tpu.pipeline_mode<synchronous>, transform_indices = @transform_7, window_bounds = array<i64: 2, 1, 128>}, {pipeline_mode = #tpu.pipeline_mode<synchronous>, transform_indices = @transform_8, window_bounds = array<i64: 128, 128>}, {pipeline_mode = #tpu.pipeline_mode<synchronous>, transform_indices = @transform_9, window_bounds = array<i64: 1, 128>}, {transform_indices = @transform_10, window_bounds = array<i64: 1, 8, 128>}, {transform_indices = @transform_11, window_bounds = array<i64: 1, 8, 128>}]} {
    %c0 = arith.constant 0 : index
    %c0_0 = arith.constant 0 : index
    %c0_1 = arith.constant 0 : index
    %0 = vector.load %arg1[%c0, %c0_0, %c0_1] : memref<1x8x128xbf16, #tpu.memory_space<vmem>>, vector<1x8x128xbf16>
    %1 = vector.shape_cast %0 : vector<1x8x128xbf16> to vector<8x128xbf16>
    %2 = arith.extf %1 : vector<8x128xbf16> to vector<8x128xf32>
    %c0_2 = arith.constant 0 : index
    %c0_3 = arith.constant 0 : index
    %3 = vector.load %arg2[%c0_2, %c0_3] : memref<8x128xbf16, #tpu.memory_space<vmem>>, vector<8x128xbf16>
    %4 = arith.extf %3 : vector<8x128xbf16> to vector<8x128xf32>
    %5 = arith.addf %2, %4 : vector<8x128xf32>
    %c0_4 = arith.constant 0 : index
    %c0_5 = arith.constant 0 : index
    %6 = vector.load %arg14[%c0_4, %c0_5] : memref<8x128xf32, #tpu.memory_space<vmem>>, vector<8x128xf32>
    tpu.vector_store %arg14[%c0_4, %c0_5], %5 {strides = array<i32>} : memref<8x128xf32, #tpu.memory_space<vmem>>, vector<8x128xf32>,
    %7 = arith.truncf %5 : vector<8x128xf32> to vector<8x128xbf16>
    %c0_6 = arith.constant 0 : index
    %c0_7 = arith.constant 0 : index
    %8 = vector.load %arg3[%c0_6, %c0_7] : memref<128x128xbf16, #tpu.memory_space<vmem>>, vector<128x128xbf16>
    %cst = arith.constant dense<0.000000e+00> : vector<8x128xf32>
    %9 = tpu.matmul %7, %8, %cst {dimension_numbers = #tpu.dot_dimension_numbers<[1], [0], [0], [1], [0, 0, 1, 1], [], []>} : vector<8x128xbf16>, vector<128x128xbf16>, vector<8x128xf32> -> vector<8x128xf32>
    %c0_8 = arith.constant 0 : index
    %c0_9 = arith.constant 0 : index
    %10 = vector.load %arg4[%c0_8, %c0_9] : memref<1x128xf32, #tpu.memory_space<vmem>>, vector<1x128xf32>
    %11 = vector.broadcast %10 : vector<1x128xf32> to vector<8x128xf32>
    %12 = arith.addf %9, %11 : vector<8x128xf32>
    %cst_10 = arith.constant 0.000000e+00 : f32
    %13 = vector.broadcast %cst_10 : f32 to vector<8x128xf32>
    %c8 = arith.constant 8 : index
    %c0_11 = arith.constant 0 : index
    %14 = vector.load %arg13[%c8, %c0_11] : memref<16x128xf32, #tpu.memory_space<vmem>>, vector<8x128xf32>
    tpu.vector_store %arg13[%c8, %c0_11], %13 {strides = array<i32>} : memref<16x128xf32, #tpu.memory_space<vmem>>, vector<8x128xf32>,
    %c0_12 = arith.constant 0 : index
    %c0_13 = arith.constant 0 : index
    %15 = vector.load %arg13[%c0_12, %c0_13] : memref<16x128xf32, #tpu.memory_space<vmem>>, vector<8x128xf32>
    tpu.vector_store %arg13[%c0_12, %c0_13], %12 {strides = array<i32>} : memref<16x128xf32, #tpu.memory_space<vmem>>, vector<8x128xf32>,
    %c0_14 = arith.constant 0 : index
    %c0_15 = arith.constant 0 : index
    %16 = vector.load %arg13[%c0_14, %c0_15] : memref<16x128xf32, #tpu.memory_space<vmem>>, vector<16x128xf32>
    %c2_i32 = arith.constant 2 : i32
    %17 = tpu.dynamic_rotate %16 by %c2_i32 dim 0 : vector<16x128xf32>, i32 -> vector<16x128xf32>
    %18 = vector.extract_strided_slice %17 {offsets = [0, 0], sizes = [8, 128], strides = [1, 1]} : vector<16x128xf32> to vector<8x128xf32>
    %c1_i32 = arith.constant 1 : i32
    %19 = tpu.dynamic_rotate %16 by %c1_i32 dim 0 : vector<16x128xf32>, i32 -> vector<16x128xf32>
    %20 = vector.extract_strided_slice %19 {offsets = [0, 0], sizes = [8, 128], strides = [1, 1]} : vector<16x128xf32> to vector<8x128xf32>
    %21 = vector.extract_strided_slice %16 {offsets = [0, 0], sizes = [8, 128], strides = [1, 1]} : vector<16x128xf32> to vector<8x128xf32>
    %c15_i32 = arith.constant 15 : i32
    %22 = tpu.dynamic_rotate %16 by %c15_i32 dim 0 : vector<16x128xf32>, i32 -> vector<16x128xf32>
    %23 = vector.extract_strided_slice %22 {offsets = [0, 0], sizes = [8, 128], strides = [1, 1]} : vector<16x128xf32> to vector<8x128xf32>
    %c14_i32 = arith.constant 14 : i32
    %24 = tpu.dynamic_rotate %16 by %c14_i32 dim 0 : vector<16x128xf32>, i32 -> vector<16x128xf32>
    %25 = vector.extract_strided_slice %24 {offsets = [0, 0], sizes = [8, 128], strides = [1, 1]} : vector<16x128xf32> to vector<8x128xf32>
    %26 = arith.truncf %18 : vector<8x128xf32> to vector<8x128xbf16>
    %27 = arith.truncf %20 : vector<8x128xf32> to vector<8x128xbf16>
    %28 = arith.truncf %21 : vector<8x128xf32> to vector<8x128xbf16>
    %29 = arith.truncf %23 : vector<8x128xf32> to vector<8x128xbf16>
    %30 = arith.truncf %25 : vector<8x128xf32> to vector<8x128xbf16>
    %31 = tpu.concatenate %26, %27, %28, %29, %30 in 1 : vector<8x128xbf16>, vector<8x128xbf16>, vector<8x128xbf16>, vector<8x128xbf16>, vector<8x128xbf16> -> vector<8x640xbf16>
    %c0_16 = arith.constant 0 : index
    %c0_17 = arith.constant 0 : index
    %c0_18 = arith.constant 0 : index
    %32 = vector.load %arg5[%c0_16, %c0_17, %c0_18] : memref<2x640x128xbf16, #tpu.memory_space<vmem>>, vector<1x640x128xbf16>
    %33 = vector.shape_cast %32 : vector<1x640x128xbf16> to vector<640x128xbf16>
    %cst_19 = arith.constant dense<0.000000e+00> : vector<8x128xf32>
    %34 = tpu.matmul %31, %33, %cst_19 {dimension_numbers = #tpu.dot_dimension_numbers<[1], [0], [0], [1], [0, 0, 1, 1], [], []>} : vector<8x640xbf16>, vector<640x128xbf16>, vector<8x128xf32> -> vector<8x128xf32>
    %c0_20 = arith.constant 0 : index
    %c0_21 = arith.constant 0 : index
    %c0_22 = arith.constant 0 : index
    %35 = vector.load %arg6[%c0_20, %c0_21, %c0_22] : memref<2x1x128xf32, #tpu.memory_space<vmem>>, vector<1x1x128xf32>
    %36 = vector.shape_cast %35 : vector<1x1x128xf32> to vector<1x128xf32>
    %37 = vector.broadcast %36 : vector<1x128xf32> to vector<8x128xf32>
    %38 = arith.addf %34, %37 : vector<8x128xf32>
    %c0_23 = arith.constant 0 : index
    %c0_24 = arith.constant 0 : index
    %c0_25 = arith.constant 0 : index
    %39 = vector.load %arg7[%c0_23, %c0_24, %c0_25] : memref<2x640x128xbf16, #tpu.memory_space<vmem>>, vector<1x640x128xbf16>
    %40 = vector.shape_cast %39 : vector<1x640x128xbf16> to vector<640x128xbf16>
    %cst_26 = arith.constant dense<0.000000e+00> : vector<8x128xf32>
    %41 = tpu.matmul %31, %40, %cst_26 {dimension_numbers = #tpu.dot_dimension_numbers<[1], [0], [0], [1], [0, 0, 1, 1], [], []>} : vector<8x640xbf16>, vector<640x128xbf16>, vector<8x128xf32> -> vector<8x128xf32>
    %c0_27 = arith.constant 0 : index
    %c0_28 = arith.constant 0 : index
    %c0_29 = arith.constant 0 : index
    %42 = vector.load %arg8[%c0_27, %c0_28, %c0_29] : memref<2x1x128xf32, #tpu.memory_space<vmem>>, vector<1x1x128xf32>
    %43 = vector.shape_cast %42 : vector<1x1x128xf32> to vector<1x128xf32>
    %44 = vector.broadcast %43 : vector<1x128xf32> to vector<8x128xf32>
    %45 = arith.addf %41, %44 : vector<8x128xf32>
    %46 = arith.negf %45 : vector<8x128xf32>
    %47 = math.exp %46 : vector<8x128xf32>
    %cst_30 = arith.constant 1.000000e+00 : f32
    %48 = vector.broadcast %cst_30 : f32 to vector<8x128xf32>
    %49 = arith.addf %48, %47 : vector<8x128xf32>
    %50 = arith.divf %48, %49 : vector<8x128xf32>
    %51 = arith.mulf %38, %50 : vector<8x128xf32>
    %52 = arith.addf %51, %21 : vector<8x128xf32>
    %cst_31 = arith.constant 0.707106769 : f32
    %53 = vector.broadcast %cst_31 : f32 to vector<8x128xf32>
    %54 = arith.mulf %52, %53 : vector<8x128xf32>
    %c0_32 = arith.constant 0 : index
    %c0_33 = arith.constant 0 : index
    %55 = vector.load %arg13[%c0_32, %c0_33] : memref<16x128xf32, #tpu.memory_space<vmem>>, vector<8x128xf32>
    tpu.vector_store %arg13[%c0_32, %c0_33], %54 {strides = array<i32>} : memref<16x128xf32, #tpu.memory_space<vmem>>, vector<8x128xf32>,
    %c0_34 = arith.constant 0 : index
    %c0_35 = arith.constant 0 : index
    %56 = vector.load %arg13[%c0_34, %c0_35] : memref<16x128xf32, #tpu.memory_space<vmem>>, vector<16x128xf32>
    %c2_i32_36 = arith.constant 2 : i32
    %57 = tpu.dynamic_rotate %56 by %c2_i32_36 dim 0 : vector<16x128xf32>, i32 -> vector<16x128xf32>
    %58 = vector.extract_strided_slice %57 {offsets = [0, 0], sizes = [8, 128], strides = [1, 1]} : vector<16x128xf32> to vector<8x128xf32>
    %c1_i32_37 = arith.constant 1 : i32
    %59 = tpu.dynamic_rotate %56 by %c1_i32_37 dim 0 : vector<16x128xf32>, i32 -> vector<16x128xf32>
    %60 = vector.extract_strided_slice %59 {offsets = [0, 0], sizes = [8, 128], strides = [1, 1]} : vector<16x128xf32> to vector<8x128xf32>
    %61 = vector.extract_strided_slice %56 {offsets = [0, 0], sizes = [8, 128], strides = [1, 1]} : vector<16x128xf32> to vector<8x128xf32>
    %c15_i32_38 = arith.constant 15 : i32
    %62 = tpu.dynamic_rotate %56 by %c15_i32_38 dim 0 : vector<16x128xf32>, i32 -> vector<16x128xf32>
    %63 = vector.extract_strided_slice %62 {offsets = [0, 0], sizes = [8, 128], strides = [1, 1]} : vector<16x128xf32> to vector<8x128xf32>
    %c14_i32_39 = arith.constant 14 : i32
    %64 = tpu.dynamic_rotate %56 by %c14_i32_39 dim 0 : vector<16x128xf32>, i32 -> vector<16x128xf32>
    %65 = vector.extract_strided_slice %64 {offsets = [0, 0], sizes = [8, 128], strides = [1, 1]} : vector<16x128xf32> to vector<8x128xf32>
    %66 = arith.truncf %58 : vector<8x128xf32> to vector<8x128xbf16>
    %67 = arith.truncf %60 : vector<8x128xf32> to vector<8x128xbf16>
    %68 = arith.truncf %61 : vector<8x128xf32> to vector<8x128xbf16>
    %69 = arith.truncf %63 : vector<8x128xf32> to vector<8x128xbf16>
    %70 = arith.truncf %65 : vector<8x128xf32> to vector<8x128xbf16>
    %71 = tpu.concatenate %66, %67, %68, %69, %70 in 1 : vector<8x128xbf16>, vector<8x128xbf16>, vector<8x128xbf16>, vector<8x128xbf16>, vector<8x128xbf16> -> vector<8x640xbf16>
    %c1 = arith.constant 1 : index
    %c0_40 = arith.constant 0 : index
    %c0_41 = arith.constant 0 : index
    %72 = vector.load %arg5[%c1, %c0_40, %c0_41] : memref<2x640x128xbf16, #tpu.memory_space<vmem>>, vector<1x640x128xbf16>
    %73 = vector.shape_cast %72 : vector<1x640x128xbf16> to vector<640x128xbf16>
    %cst_42 = arith.constant dense<0.000000e+00> : vector<8x128xf32>
    %74 = tpu.matmul %71, %73, %cst_42 {dimension_numbers = #tpu.dot_dimension_numbers<[1], [0], [0], [1], [0, 0, 1, 1], [], []>} : vector<8x640xbf16>, vector<640x128xbf16>, vector<8x128xf32> -> vector<8x128xf32>
    %c1_43 = arith.constant 1 : index
    %c0_44 = arith.constant 0 : index
    %c0_45 = arith.constant 0 : index
    %75 = vector.load %arg6[%c1_43, %c0_44, %c0_45] : memref<2x1x128xf32, #tpu.memory_space<vmem>>, vector<1x1x128xf32>
    %76 = vector.shape_cast %75 : vector<1x1x128xf32> to vector<1x128xf32>
    %77 = vector.broadcast %76 : vector<1x128xf32> to vector<8x128xf32>
    %78 = arith.addf %74, %77 : vector<8x128xf32>
    %c1_46 = arith.constant 1 : index
    %c0_47 = arith.constant 0 : index
    %c0_48 = arith.constant 0 : index
    %79 = vector.load %arg7[%c1_46, %c0_47, %c0_48] : memref<2x640x128xbf16, #tpu.memory_space<vmem>>, vector<1x640x128xbf16>
    %80 = vector.shape_cast %79 : vector<1x640x128xbf16> to vector<640x128xbf16>
    %cst_49 = arith.constant dense<0.000000e+00> : vector<8x128xf32>
    %81 = tpu.matmul %71, %80, %cst_49 {dimension_numbers = #tpu.dot_dimension_numbers<[1], [0], [0], [1], [0, 0, 1, 1], [], []>} : vector<8x640xbf16>, vector<640x128xbf16>, vector<8x128xf32> -> vector<8x128xf32>
    %c1_50 = arith.constant 1 : index
    %c0_51 = arith.constant 0 : index
    %c0_52 = arith.constant 0 : index
    %82 = vector.load %arg8[%c1_50, %c0_51, %c0_52] : memref<2x1x128xf32, #tpu.memory_space<vmem>>, vector<1x1x128xf32>
    %83 = vector.shape_cast %82 : vector<1x1x128xf32> to vector<1x128xf32>
    %84 = vector.broadcast %83 : vector<1x128xf32> to vector<8x128xf32>
    %85 = arith.addf %81, %84 : vector<8x128xf32>
    %86 = arith.negf %85 : vector<8x128xf32>
    %87 = math.exp %86 : vector<8x128xf32>
    %cst_53 = arith.constant 1.000000e+00 : f32
    %88 = vector.broadcast %cst_53 : f32 to vector<8x128xf32>
    %89 = arith.addf %88, %87 : vector<8x128xf32>
    %90 = arith.divf %88, %89 : vector<8x128xf32>
    %91 = arith.mulf %78, %90 : vector<8x128xf32>
    %92 = arith.addf %91, %61 : vector<8x128xf32>
    %cst_54 = arith.constant 0.707106769 : f32
    %93 = vector.broadcast %cst_54 : f32 to vector<8x128xf32>
    %94 = arith.mulf %92, %93 : vector<8x128xf32>
    %c0_55 = arith.constant 0 : index
    %c0_56 = arith.constant 0 : index
    %95 = vector.load %arg13[%c0_55, %c0_56] : memref<16x128xf32, #tpu.memory_space<vmem>>, vector<8x128xf32>
    tpu.vector_store %arg13[%c0_55, %c0_56], %94 {strides = array<i32>} : memref<16x128xf32, #tpu.memory_space<vmem>>, vector<8x128xf32>,
    %c0_57 = arith.constant 0 : index
    %c0_58 = arith.constant 0 : index
    %96 = vector.load %arg13[%c0_57, %c0_58] : memref<16x128xf32, #tpu.memory_space<vmem>>, vector<8x128xf32>
    %97 = arith.truncf %96 : vector<8x128xf32> to vector<8x128xbf16>
    %c0_59 = arith.constant 0 : index
    %c0_60 = arith.constant 0 : index
    %98 = vector.load %arg9[%c0_59, %c0_60] : memref<128x128xbf16, #tpu.memory_space<vmem>>, vector<128x128xbf16>
    %cst_61 = arith.constant dense<0.000000e+00> : vector<8x128xf32>
    %99 = tpu.matmul %97, %98, %cst_61 {dimension_numbers = #tpu.dot_dimension_numbers<[1], [0], [0], [1], [0, 0, 1, 1], [], []>} : vector<8x128xbf16>, vector<128x128xbf16>, vector<8x128xf32> -> vector<8x128xf32>
    %c0_62 = arith.constant 0 : index
    %c0_63 = arith.constant 0 : index
    %100 = vector.load %arg10[%c0_62, %c0_63] : memref<1x128xf32, #tpu.memory_space<vmem>>, vector<1x128xf32>
    %101 = vector.broadcast %100 : vector<1x128xf32> to vector<8x128xf32>
    %102 = arith.addf %99, %101 : vector<8x128xf32>
    %c0_64 = arith.constant 0 : index
    %c0_65 = arith.constant 0 : index
    %c0_66 = arith.constant 0 : index
    %103 = vector.load %arg11[%c0_64, %c0_65, %c0_66] : memref<1x8x128xf32, #tpu.memory_space<vmem>>, vector<1x8x128xf32>
    %104 = vector.shape_cast %103 : vector<1x8x128xf32> to vector<8x128xf32>
    %105 = vector.shape_cast %102 : vector<8x128xf32> to vector<1x8x128xf32>
    tpu.vector_store %arg11[%c0_64, %c0_65, %c0_66], %105 {strides = array<i32>} : memref<1x8x128xf32, #tpu.memory_space<vmem>>, vector<1x8x128xf32>,
    %c0_67 = arith.constant 0 : index
    %c0_68 = arith.constant 0 : index
    %106 = vector.load %arg14[%c0_67, %c0_68] : memref<8x128xf32, #tpu.memory_space<vmem>>, vector<8x128xf32>
    %107 = arith.addf %102, %106 : vector<8x128xf32>
    %cst_69 = arith.constant 0.707106769 : f32
    %108 = vector.broadcast %cst_69 : f32 to vector<8x128xf32>
    %109 = arith.mulf %107, %108 : vector<8x128xf32>
    %c0_70 = arith.constant 0 : index
    %c0_71 = arith.constant 0 : index
    %c0_72 = arith.constant 0 : index
    %110 = vector.load %arg12[%c0_70, %c0_71, %c0_72] : memref<1x8x128xf32, #tpu.memory_space<vmem>>, vector<1x8x128xf32>
    %111 = vector.shape_cast %110 : vector<1x8x128xf32> to vector<8x128xf32>
    %112 = vector.shape_cast %109 : vector<8x128xf32> to vector<1x8x128xf32>
    tpu.vector_store %arg12[%c0_70, %c0_71, %c0_72], %112 {strides = array<i32>} : memref<1x8x128xf32, #tpu.memory_space<vmem>>, vector<1x8x128xf32>,
    return
  }
  func.func @transform_0(%arg0: i32) -> (i32, i32, i32) {
    %c0_i32 = arith.constant 0 : i32
    %c0_i32_0 = arith.constant 0 : i32
    %c0_i32_1 = arith.constant 0 : i32
    return %arg0, %c0_i32, %c0_i32_0 : i32, i32, i32
  }
  func.func @transform_1(%arg0: i32) -> (i32, i32) {
    %c0_i32 = arith.constant 0 : i32
    %c0_i32_0 = arith.constant 0 : i32
    %c0_i32_1 = arith.constant 0 : i32
    return %c0_i32, %c0_i32_0 : i32, i32
  }
  func.func @transform_2(%arg0: i32) -> (i32, i32) {
    %c0_i32 = arith.constant 0 : i32
    %c0_i32_0 = arith.constant 0 : i32
    %c0_i32_1 = arith.constant 0 : i32
    return %c0_i32, %c0_i32_0 : i32, i32
  }
  func.func @transform_3(%arg0: i32) -> (i32, i32) {
    %c0_i32 = arith.constant 0 : i32
    %c0_i32_0 = arith.constant 0 : i32
    %c0_i32_1 = arith.constant 0 : i32
    return %c0_i32, %c0_i32_0 : i32, i32
  }
  func.func @transform_4(%arg0: i32) -> (i32, i32, i32) {
    %c0_i32 = arith.constant 0 : i32
    %c0_i32_0 = arith.constant 0 : i32
    %c0_i32_1 = arith.constant 0 : i32
    %c0_i32_2 = arith.constant 0 : i32
    return %c0_i32, %c0_i32_0, %c0_i32_1 : i32, i32, i32
  }
  func.func @transform_5(%arg0: i32) -> (i32, i32, i32) {
    %c0_i32 = arith.constant 0 : i32
    %c0_i32_0 = arith.constant 0 : i32
    %c0_i32_1 = arith.constant 0 : i32
    %c0_i32_2 = arith.constant 0 : i32
    return %c0_i32, %c0_i32_0, %c0_i32_1 : i32, i32, i32
  }
  func.func @transform_6(%arg0: i32) -> (i32, i32, i32) {
    %c0_i32 = arith.constant 0 : i32
    %c0_i32_0 = arith.constant 0 : i32
    %c0_i32_1 = arith.constant 0 : i32
    %c0_i32_2 = arith.constant 0 : i32
    return %c0_i32, %c0_i32_0, %c0_i32_1 : i32, i32, i32
  }
  func.func @transform_7(%arg0: i32) -> (i32, i32, i32) {
    %c0_i32 = arith.constant 0 : i32
    %c0_i32_0 = arith.constant 0 : i32
    %c0_i32_1 = arith.constant 0 : i32
    %c0_i32_2 = arith.constant 0 : i32
    return %c0_i32, %c0_i32_0, %c0_i32_1 : i32, i32, i32
  }
  func.func @transform_8(%arg0: i32) -> (i32, i32) {
    %c0_i32 = arith.constant 0 : i32
    %c0_i32_0 = arith.constant 0 : i32
    %c0_i32_1 = arith.constant 0 : i32
    return %c0_i32, %c0_i32_0 : i32, i32
  }
  func.func @transform_9(%arg0: i32) -> (i32, i32) {
    %c0_i32 = arith.constant 0 : i32
    %c0_i32_0 = arith.constant 0 : i32
    %c0_i32_1 = arith.constant 0 : i32
    return %c0_i32, %c0_i32_0 : i32, i32
  }
  func.func @transform_10(%arg0: i32) -> (i32, i32, i32) {
    %c0_i32 = arith.constant 0 : i32
    %c0_i32_0 = arith.constant 0 : i32
    %c0_i32_1 = arith.constant 0 : i32
    return %arg0, %c0_i32, %c0_i32_0 : i32, i32, i32
  }
  func.func @transform_11(%arg0: i32) -> (i32, i32, i32) {
    %c0_i32 = arith.constant 0 : i32
    %c0_i32_0 = arith.constant 0 : i32
    %c0_i32_1 = arith.constant 0 : i32
    return %arg0, %c0_i32, %c0_i32_0 : i32, i32, i32
  }
}

</mosaic_0001>

<bundles_post_ra>
// kernel: tpu_custom_call.1
= control target key start
LH: loop header
LB: loop body
LE: loop exit
PB: predicated region body
PF: predicated region fallthrough
CT: control target
= control target key end

     0   :  { %s4477_s0 = inlined_call_operand.hbm [shape: bf16[2,8,128], index: 0, kind: input, shape index: {}]   ;;  %s4478_s1 = inlined_call_operand.hbm [shape: bf16[8,128], index: 1, kind: input, shape index: {}]   ;;  %s4479_s2 = inlined_call_operand.hbm [shape: bf16[128,128], index: 2, kind: input, shape index: {}]   ;;  %s4480_s3 = inlined_call_operand.vmem [shape: f32[1,128], index: 3, kind: input, shape index: {}]   ;;  %s4481_s4 = inlined_call_operand.hbm [shape: bf16[2,640,128], index: 4, kind: input, shape index: {}]   ;;  %s4482_s5 = inlined_call_operand.vmem [shape: f32[2,1,128], index: 5, kind: input, shape index: {}]   ;;  %s4483_s6 = inlined_call_operand.hbm [shape: bf16[2,640,128], index: 6, kind: input, shape index: {}]   ;;  %s4484_s7 = inlined_call_operand.vmem [shape: f32[2,1,128], index: 7, kind: input, shape index: {}]   ;;  %s4485_s8 = inlined_call_operand.hbm [shape: bf16[128,128], index: 8, kind: input, shape index: {}]   ;;  %s4486_s9 = inlined_call_operand.vmem [shape: f32[1,128], index: 9, kind: input, shape index: {}]   ;;  %s4487_s10 = inlined_call_operand.hbm [shape: f32[2,8,128], index: 10, kind: output, shape index: {0}]   ;;  %s4488_s11 = inlined_call_operand.hbm [shape: f32[2,8,128], index: 11, kind: output, shape index: {1}]  }
   0x1   :  { %4495 = sst [smem:[#allocation24_spill]] %s4478_s1 }
   0x2   :  { %4496 = sst [smem:[#allocation25_spill]] %s4481_s4 }
   0x3   :  { %4497 = sst [smem:[#allocation26_spill]] %s4487_s10 }
   0x4   :  { %4498 = sst [smem:[#allocation27_spill]] %s4488_s11 }
   0x5   :  { %17 = vsyncpa [#allocation5], 0 }
   0x6   :  { %19 = vsyncpa [#allocation5 + $0x1], 0 }
   0x7   :  { %20 = vsyncpa [#allocation8], 0 }
   0x8   :  { %21 = vsyncpa [#allocation11], 0 }
   0x9   :  { %22 = vsyncpa [#allocation14], 0 }
   0xa   :  { %23 = vsyncpa [#allocation6], 0 }
   0xb   :  { %25 = vsyncpa [#allocation6 + $0x1], 0 }
   0xc   :  { %26 = vsyncpa [#allocation17], 0 }
   0xd   :  { %28 = vsyncpa [#allocation17 + $0x1], 0  ;;  %s3966_s17 = smov 0   ;;  %s3968_s18 = smov 0  }
   0xe   :  { %s3970_s19 = smov 0   ;;  %s3972_s20 = smov 0  }
   0xf LB: > { %s3894_s21 = smov [#allocation7]   ;;  %s3987_s23 = sadd.s32 4294967295, %s3892_s20   ;;  %s3892_s20 = sphi %s3972_s20, %s4526_s20   ;;  %s3888_s19 = sphi %s3970_s19, %s4525_s19   ;;  %s3884_s18 = sphi %s3968_s18, %s4524_s18   ;;  %s3880_s17 = sphi %s3966_s17, %s4523_s17  }
  0x10   : > { %s319_s22 = sshll.u32 %s3894_s21, 4  ;;  %p2762_p0 = scmp.ge.s32.totalorder %s3892_s20, 1  ;;  %s320_s22 = int_to_ptr.vmem [resolvable:$true] %s319_s22 }
  0x11   : > { %p4489_p1 = scmp.eq.s32.totalorder %s3987_s23, 0  ;;  %p306_p2 = scmp.lt.s32.totalorder %s3892_s20, 3 }
  0x12   : > { %s3895_s25 = smov [#allocation10]   ;;  %s3896_s28 = smov [#allocation9]  }
  0x13   : > { %p3992_p3 = pnand %p2762_p0, %p306_p2  ;;  %s345_s26 = sshll.u32 %s3895_s25, 4  ;;  %s4005_s26 = int_to_ptr.vmem [resolvable:$true] %s345_s26 }
  0x14   : > { %s329_s29 = sshll.u32 %s3896_s28, 4  ;;  %s4501_s1 = sld [smem:[#allocation24_spill]]  ;;  %s4007_s29 = int_to_ptr.vmem [resolvable:$true] %s329_s29 }
  0x15   : > { %s4499_s24 = scalar_select %p3992_p3, 1, 0 }
  0x16   : > { %p3348_p5 = pneg %p3992_p3 }
  0x18   : > { %p4001_p6 = pnand %p3348_p5, %p4489_p1 }
  0x1a   : > { %s3612_s13 = scalar_lea.hbm %s4501_s1, 64  ;;  %p4017_p8 = pneg %p4001_p6 }
  0x1b   : > { %p3613_p7 = scmp.ne.s32.totalorder %s4501_s1, %s3612_s13  ;;  %p3619_p11 = scmp.lt.u32.totalorder %s3612_s13, %s4501_s1 }
  0x1d   : > { %p3615_p9 = pnand %p4017_p8, %p3613_p7 }
  0x1f   : > { %p3616_p10 = pneg %p3615_p9 }
  0x21   : > { %p3621_p12 = pnand %p3619_p11, %p3616_p10 }
  0x23   : > { %3624 = shalt.err (!%p3621_p12)
}
  0x24   : > { %s3625_s28 = scalar_lea.vmem %s320_s22, 64  ;;  %p3633_p5 = scmp.lt.s32.totalorder %s320_s22, %s320_s22 }
  0x25   : > { %p3626_p13 = scmp.ne.s32.totalorder %s320_s22, %s3625_s28  ;;  %p3634_p4 = scmp.lt.s32.totalorder %s3625_s28, %s3625_s28 }
  0x27   : > { %p3628_p0 = pnand %p3626_p13, %p4017_p8  ;;  %p3635_p1 = por %p3634_p4, %p3633_p5 }
  0x29   : > { %p3629_p2 = pneg %p3628_p0 }
  0x2b   : > { %p3636_p3 = pnand %p3635_p1, %p3629_p2 }
  0x2d   : > { %3639 = shalt.err (!%p3636_p3)
}
  0x2e   : > { %3351 = dma.hbm_to_vmem [thread:$0]  (!%p4001_p6), %s4501_s1, 64, %s320_s22, [#allocation8]  }
  0x2f   : > { %s4503_s4 = sld [smem:[#allocation25_spill]] }
  0x35   : > { %s3640_s15 = scalar_lea.hbm %s4503_s4, 10240 }
  0x36   : > { %p3641_p7 = scmp.ne.s32.totalorder %s4503_s4, %s3640_s15  ;;  %p3647_p1 = scmp.lt.u32.totalorder %s3640_s15, %s4503_s4 }
  0x38   : > { %p3643_p9 = pnand %p3641_p7, %p4017_p8 }
  0x3a   : > { %p3644_p4 = pneg %p3643_p9 }
  0x3c   : > { %p3649_p3 = pnand %p3647_p1, %p3644_p4 }
  0x3e   : > { %3652 = shalt.err (!%p3649_p3)
}
  0x3f   : > { %s3653_s22 = scalar_lea.vmem %s4005_s26, 10240  ;;  %p3661_p13 = scmp.lt.s32.totalorder %s4005_s26, %s4005_s26 }
  0x40   : > { %p3654_p10 = scmp.ne.s32.totalorder %s4005_s26, %s3653_s22  ;;  %p3662_p0 = scmp.lt.s32.totalorder %s3653_s22, %s3653_s22 }
  0x42   : > { %p3656_p11 = pnand %p3654_p10, %p4017_p8  ;;  %p3663_p2 = por %p3662_p0, %p3661_p13 }
  0x44   : > { %p3657_p12 = pneg %p3656_p11 }
  0x46   : > { %p3664_p5 = pnand %p3663_p2, %p3657_p12 }
  0x48   : > { %3667 = shalt.err (!%p3664_p5)
}
  0x49   : > { %s3897_s30 = smov 64   ;;  %s3898_s11 = smov 4  }
  0x4a   : > { %3357 = dma.hbm_to_vmem [thread:$0]  (!%p4001_p6), %s4503_s4, 10240, %s4005_s26, [#allocation11], %s3897_s30, %s3897_s30, %s3898_s11  }
  0x4b   : > { %s3668_s21 = scalar_lea.hbm %s4479_s2, 1024 }
  0x4c   : > { %p3669_p7 = scmp.ne.s32.totalorder %s4479_s2, %s3668_s21  ;;  %p3675_p1 = scmp.lt.u32.totalorder %s3668_s21, %s4479_s2 }
  0x4e   : > { %p3671_p9 = pnand %p3669_p7, %p4017_p8 }
  0x50   : > { %p3672_p4 = pneg %p3671_p9 }
  0x52   : > { %p3677_p3 = pnand %p3675_p1, %p3672_p4 }
  0x54   : > { %3680 = shalt.err (!%p3677_p3)
}
  0x55   : > { %s3681_s26 = scalar_lea.vmem %s4007_s29, 1024  ;;  %p3689_p13 = scmp.lt.s32.totalorder %s4007_s29, %s4007_s29 }
  0x56   : > { %p3682_p10 = scmp.ne.s32.totalorder %s4007_s29, %s3681_s26  ;;  %p3690_p0 = scmp.lt.s32.totalorder %s3681_s26, %s3681_s26 }
  0x58   : > { %p3684_p11 = pnand %p3682_p10, %p4017_p8  ;;  %p3691_p2 = por %p3690_p0, %p3689_p13 }
  0x5a   : > { %p3685_p12 = pneg %p3684_p11 }
  0x5c   : > { %p3692_p5 = pnand %p3691_p2, %p3685_p12 }
  0x5e   : > { %3695 = shalt.err (!%p3692_p5)
}
  0x5f   : > { %3354 = dma.hbm_to_vmem [thread:$0]  (!%p4001_p6), %s4479_s2, 1024, %s4007_s29, [#allocation8], %s3897_s30, %s3897_s30, %s3898_s11  }
  0x60   : > { %s3899_s13 = smov [#allocation12]   ;;  %s3900_s15 = smov [#allocation13]  }
  0x61   : > { %s361_s14 = sshll.u32 %s3899_s13, 4  ;;  %s377_s21 = sshll.u32 %s3900_s15, 4  ;;  %s362_s14 = int_to_ptr.vmem [resolvable:$true] %s361_s14  ;;  %s378_s21 = int_to_ptr.vmem [resolvable:$true] %s377_s21 }
  0x62   : > { %s3696_s22 = scalar_lea.hbm %s4483_s6, 10240 }
  0x63   : > { %p3697_p7 = scmp.ne.s32.totalorder %s4483_s6, %s3696_s22  ;;  %p3703_p1 = scmp.lt.u32.totalorder %s3696_s22, %s4483_s6 }
  0x65   : > { %p3699_p9 = pnand %p3697_p7, %p4017_p8 }
  0x67   : > { %p3700_p4 = pneg %p3699_p9 }
  0x69   : > { %p3705_p3 = pnand %p3703_p1, %p3700_p4 }
  0x6b   : > { %3708 = shalt.err (!%p3705_p3)
}
  0x6c   : > { %s3709_s29 = scalar_lea.vmem %s362_s14, 10240  ;;  %p3717_p13 = scmp.lt.s32.totalorder %s362_s14, %s362_s14 }
  0x6d   : > { %p3710_p10 = scmp.ne.s32.totalorder %s362_s14, %s3709_s29  ;;  %p3718_p0 = scmp.lt.s32.totalorder %s3709_s29, %s3709_s29 }
  0x6f   : > { %p3712_p11 = pnand %p3710_p10, %p4017_p8  ;;  %p3719_p2 = por %p3718_p0, %p3717_p13 }
  0x71   : > { %p3713_p12 = pneg %p3712_p11 }
  0x73   : > { %p3720_p5 = pnand %p3719_p2, %p3713_p12 }
  0x75   : > { %3723 = shalt.err (!%p3720_p5)
}
  0x76   : > { %3360 = dma.hbm_to_vmem [thread:$0]  (!%p4001_p6), %s4483_s6, 10240, %s362_s14, [#allocation11], %s3897_s30, %s3897_s30, %s3898_s11  }
  0x77   : > { %s3724_s15 = scalar_lea.hbm %s4485_s8, 1024 }
  0x78   : > { %p3725_p7 = scmp.ne.s32.totalorder %s4485_s8, %s3724_s15  ;;  %p3731_p1 = scmp.lt.u32.totalorder %s3724_s15, %s4485_s8 }
  0x7a   : > { %p3727_p9 = pnand %p3725_p7, %p4017_p8 }
  0x7c   : > { %p3728_p4 = pneg %p3727_p9 }
  0x7e   : > { %p3733_p3 = pnand %p3731_p1, %p3728_p4 }
  0x80   : > { %3736 = shalt.err (!%p3733_p3)
}
  0x81   : > { %s3737_s1 = scalar_lea.vmem %s378_s21, 1024  ;;  %p3745_p13 = scmp.lt.s32.totalorder %s378_s21, %s378_s21 }
  0x82   : > { %p3738_p10 = scmp.ne.s32.totalorder %s378_s21, %s3737_s1  ;;  %p3746_p0 = scmp.lt.s32.totalorder %s3737_s1, %s3737_s1 }
  0x84   : > { %p3740_p11 = pnand %p3738_p10, %p4017_p8  ;;  %p3747_p2 = por %p3746_p0, %p3745_p13 }
  0x86   : > { %p3741_p12 = pneg %p3740_p11 }
  0x88   : > { %p3748_p5 = pnand %p3747_p2, %p3741_p12 }
  0x8a   : > { %3751 = shalt.err (!%p3748_p5)
}
  0x8b   : > { %3363 = dma.hbm_to_vmem [thread:$0]  (!%p4001_p6), %s4485_s8, 1024, %s378_s21, [#allocation14], %s3897_s30, %s3897_s30, %s3898_s11  }
  0x8c   : > { %s2761_s27 = sadd.s32 4294967294, %s3892_s20   ;;  %s4129_s16 = sadd.s32 1, %s3892_s20  }
  0x8d   : > { %s41_s4 = sadd.s32 1, %s3888_s19  ;;  %s38_s10 = ssub.s32 %s3892_s20, %s4129_s16 }
  0x8e   : > { %p48_p8 = scmp.ne.s32.totalorder %s3888_s19, %s3884_s18  ;;  %p39_p7 = scmp.eq.s32.totalorder %s38_s10, 0 }
  0x8f   : > { %p49_p9 = scmp.eq.s32.totalorder %s3892_s20, 0  ;;  %p54_p4 = scmp.ne.s32.totalorder %s3884_s18, %s3880_s17 }
  0x90   : > { %p267_p1 = scmp.eq.s32.totalorder %s3987_s23, 1  ;;  %p4504_p10 = scmp.eq.s32.totalorder %s3987_s23, 0 }
  0x91   : > { %s4141_s12 = scalar_select %p39_p7, %s3888_s19, %s41_s4  }
  0x92   : > { %p50_p3 = por %p49_p9, %p48_p8  ;;  %p4145_p11 = por %p4504_p10, %p54_p4 }
  0x93   : > { %p4149_p6 = por %p267_p1, %p48_p8  ;;  %p273_p12 = scmp.eq.s32.totalorder %s2761_s27, 1 }
  0x94   : > { %p3380_p13 = scmp.lt.s32.totalorder %s3892_s20, 2  ;;  %s394_s11 = sand.u32 1, %s3888_s19  }
  0x95   : > { %s4506_s30 = scalar_select %p4149_p6, 1, 0 }
  0x96   : > { %p4155_p0 = por %p273_p12, %p54_p4  ;;  %s2769_s15 = sshll.u32 %s394_s11, 2 }
  0x97   : > { %s2770_s25 = sshll.u32 %s3892_s20, 6  ;;  %s398_s1 = scalar_lea.vmem [#allocation4], %s2769_s15 }
  0x98   : > { %s4507_s21 = scalar_select %p4155_p0, 1, 0 }
  0x99   : > { %s4163_s26 = scalar_lea.hbm %s4477_s0, %s2770_s25  ;;  %s405_s14 = sshll.u32 %s398_s1, 4  ;;  %s4169_s14 = int_to_ptr.vmem [resolvable:$true] %s405_s14 }
  0x9a   : > { %p4165_p2 = pnand %p3380_p13, %p50_p3  ;;  %s395_s27 = scalar_lea.sflag [#allocation5], %s394_s11 }
  0x9b   : > { %s3752_s4 = scalar_lea.hbm %s4163_s26, 64  ;;  %s3757_s25 = scalar_lea.hbm %s4477_s0, 128 }
  0x9c   : > { %p3753_p5 = scmp.ne.s32.totalorder %s4163_s26, %s3752_s4  ;;  %p3754_p8 = pneg %p4165_p2 }
  0x9d   : > { %p3758_p4 = scmp.lt.u32.totalorder %s4163_s26, %s4477_s0  ;;  %p3759_p1 = scmp.lt.u32.totalorder %s3757_s25, %s3752_s4 }
  0x9e   : > { %p3755_p7 = pnand %p3754_p8, %p3753_p5  ;;  %p3761_p10 = scmp.lt.u32.totalorder %s3752_s4, %s4163_s26 }
  0x9f   : > { %p3760_p3 = por %p3759_p1, %p3758_p4 }
  0xa0   : > { %p3756_p9 = pneg %p3755_p7 }
  0xa1   : > { %p3762_p12 = por %p3761_p10, %p3760_p3 }
  0xa3   : > { %p3763_p13 = pnand %p3762_p12, %p3756_p9 }
  0xa5   : > { %3766 = shalt.err (!%p3763_p13)
}
  0xa6   : > { %s3767_s11 = scalar_lea.vmem %s4169_s14, 64  ;;  %s3901_s1 = smov [#allocation4]  }
  0xa7   : > { %p3768_p5 = scmp.ne.s32.totalorder %s4169_s14, %s3767_s11  ;;  %s3772_s10 = sshll.u32 %s3901_s1, 4  ;;  %s3773_s10 = int_to_ptr.vmem [resolvable:$false] %s3772_s10 }
  0xa8   : > { %s3774_s15 = scalar_lea.vmem %s3773_s10, 128  ;;  %p3775_p6 = scmp.lt.s32.totalorder %s4169_s14, %s3773_s10 }
  0xa9   : > { %p3770_p7 = pnand %p3768_p5, %p3754_p8  ;;  %p3776_p4 = scmp.lt.s32.totalorder %s3774_s15, %s3767_s11 }
  0xab   : > { %p3771_p0 = pneg %p3770_p7  ;;  %p3777_p1 = por %p3776_p4, %p3775_p6 }
  0xad   : > { %p3778_p3 = pnand %p3777_p1, %p3771_p0 }
  0xaf   : > { %3781 = shalt.err (!%p3778_p3)
}
  0xb0   : > { %3367 = dma.hbm_to_vmem [thread:$0]  (!%p4165_p2), %s4163_s26, 64, %s4169_s14, %s395_s27  }
  0xb1   : > { %p4509_p9 = scmp.ne.s32.totalorder %s4499_s24, 0 }
  0xb2   : > { %s4199_s4 = sand.u32 (!%p4509_p9), 1, %s3884_s18  }
  0xb3   : > { %414 = sbr.rel (%p4509_p9) target bundleno = 1340 (0x53c), region = 60  ;;  %s2772_s25 = sshll.u32 (!%p4509_p9), %s4199_s4, 2 }
  0xb4   : > { %s417_s28 = scalar_lea.sflag (!%p4509_p9), [#allocation5], %s4199_s4  ;;  %s4203_s22 = scalar_lea.vmem (!%p4509_p9), [#allocation4], %s2772_s25 }
  0xba   : > { %3855 = dma.done.wait (%p4145_p11), %s417_s28, 64  }
  0xbb   : > { %3857 = vsyncadd (%p4145_p11), %s417_s28, 4294967232  ;;  %p4510_p6 = scmp.eq.s32.totalorder %s3987_s23, 0 }
  0xbd   : > { %3859 = dma.done.wait (%p4510_p6), [#allocation8], 1088   ;;  %p4511_p0 = pmov %p4510_p6 }
  0xbf   : > { %3861 = vsyncadd (%p4511_p0), [#allocation8], 4294966208  ;;  %p4512_p2 = pmov %p4511_p0 }
  0xc0   : > { %p4513_p8 = pmov %p4511_p0 }
  0xc1   : > { %3863 = dma.done.wait (%p4512_p2), [#allocation11], 20480  }
  0xc2   : > { %3865 = vsyncadd (%p4513_p8), [#allocation11], 4294946816  ;;  %p4514_p10 = pmov %p4511_p0 }
  0xc3   : > { %p4515_p12 = pmov %p4511_p0 }
  0xc4   : > { %3867 = dma.done.wait (%p4514_p10), [#allocation14], 1024  }
  0xc5   : > { %3869 = vsyncadd (%p4515_p12), [#allocation14], 4294966272  ;;  %v3902_v0 = vmov 0.0   ;;  %vm3903_vm0 = vmmov 0   ;;  %v3428_v1 = vld [vmem:[#allocation9] sm:$0xff]   ;;  %v3429_v2 = vld [vmem:[#allocation9 + $0x8] sm:$0xff]   ;;  %v609_v48 = vlaneseq }
  0xc6   : > { %3202 = vmatprep.subr.bf16.mxu0 %v3902_v0  ;;  %3218 = vmatprep.mubr.msk.bf16.mxu0 %vm3903_vm0, %v3902_v0  ;;  %v3430_v3 = vld [vmem:[#allocation9 + $0x10] sm:$0xff]   ;;  %v3436_v4 = vld [vmem:[#allocation10 + $0x40] sm:$0xff]   ;;  %v3431_v5 = vld [vmem:[#allocation9 + $0x18] sm:$0xff]   ;;  %v4245_v54 = vrot.slane %v3902_v0, 7  ;;  %v4248_v55 = vrot.slane %v3902_v0, 1  ;;  %v4251_v56 = vrot.slane %v3902_v0, 6 }
  0xc7   : > { %3203 = vmatpush3.bf16.msra.mxu0 %v3428_v1  ;;  %2981 = vmatprep.subr.bf16.mxu1 %v3436_v4  ;;  %v3438_v6 = vld [vmem:[#allocation10] sm:$0xff]   ;;  %v3440_v7 = vld [vmem:[#allocation10 + $0x48] sm:$0xff]   ;;  %v485_v11 = vld [vmem:[%s4203_s22] sm:$0xf]  ;;  %v4240_v50 = vshrl.u32 %v609_v48, 7  ;;  %s2778_s25 = sshll.u32 %s4199_s4, 3 }
  0xc8   : > { %3204 = vmatprep.subr.bf16.mxu0 %v3902_v0  ;;  %2982 = vmatpush3.bf16.msra.mxu1 %v3438_v6  ;;  %v3432_v8 = vld [vmem:[#allocation9 + $0x20] sm:$0xff]   ;;  %v3442_v9 = vld [vmem:[#allocation10 + $0x8] sm:$0xff]   ;;  %v3444_v12 = vld [vmem:[#allocation10 + $0x50] sm:$0xff]   ;;  %v486_v15 = vunpack.c.l.bf16 %v485_v11  ;;  %s4494_s24 = sshll.u32 %s3987_s23, 7  ;;  %s476_s13 = scalar_lea.vmem [#allocation15], %s2778_s25 }
  0xc9   : > { %2983 = vmatprep.subr.bf16.mxu1 %v3440_v7  ;;  %v3433_v10 = vld [vmem:[#allocation9 + $0x28] sm:$0xff]   ;;  %v487_v13 = vld [vmem:[#allocation7] sm:$0xf]  ;;  %v3446_v14 = vld [vmem:[#allocation10 + $0x10] sm:$0xff]   ;;  %vm615_vm1 = vcmp.lt.s32.totalorder %v4240_v50, 1  ;;  %vm619_vm2 = vcmp.lt.s32.totalorder %v4240_v50, 7 }
  0xca   : > { %v488_v16 = vunpack.c.l.bf16 %v487_v13  ;;  %v3448_v17 = vld [vmem:[#allocation10 + $0x58] sm:$0xff]   ;;  %v3434_v18 = vld [vmem:[#allocation9 + $0x30] sm:$0xff]   ;;  %v3452_v22 = vld [vmem:[#allocation10 + $0x60] sm:$0xff]   ;;  %vm611_vm3 = vcmp.lt.s32.totalorder %v4240_v50, 2  ;;  %vm623_vm4 = vcmp.lt.s32.totalorder %v4240_v50, 6  ;;  %s2598_s26 = sshll.u32 %s476_s13, 4  ;;  %s4397_s26 = int_to_ptr.vmem [resolvable:$true] %s2598_s26 }
  0xcb   : > { %3205 = vmatpush3.bf16.msra.mxu0 %v3429_v2  ;;  %v3450_v19 = vld [vmem:[#allocation10 + $0x18] sm:$0xff]   ;;  %v3437_v23 = vld [vmem:[#allocation10 + $0xc0] sm:$0xff]   ;;  %v3456_v27 = vld [vmem:[#allocation10 + $0x68] sm:$0xff]   ;;  %s4516_s27 = sld [smem:[#allocation26_spill]]  ;;  %s4399_s1 = scalar_lea.vmem [#allocation16], %s2778_s25 }
  0xcc   : > { %3206 = vmatprep.subr.bf16.mxu0 %v3902_v0  ;;  %2984 = vmatpush3.bf16.msra.mxu1 %v3442_v9  ;;  %v3435_v20 = vld [vmem:[#allocation9 + $0x38] sm:$0xff]   ;;  %v4231_v21 = vadd.f32 %v488_v16, %v486_v15  ;;  %v3454_v24 = vld [vmem:[#allocation10 + $0x20] sm:$0xff]   ;;  %v3441_v28 = vld [vmem:[#allocation10 + $0xc8] sm:$0xff]   ;;  %s2580_s15 = scalar_lea.sflag [#allocation6], %s4199_s4  ;;  %s3782_s28 = scalar_lea.vmem %s4397_s26, 128 }
  0xcd   : > { %2985 = vmatprep.subr.bf16.mxu1 %v3444_v12  ;;  %v3439_v25 = vld [vmem:[#allocation10 + $0x80] sm:$0xff]   ;;  %v3458_v29 = vld [vmem:[#allocation10 + $0x28] sm:$0xff]   ;;  %v3445_v31 = vld [vmem:[#allocation10 + $0xd0] sm:$0xff]   ;;  %p3783_p11 = scmp.ne.s32.totalorder %s4397_s26, %s3782_s28  ;;  %p4517_p13 = scmp.ne.s32.totalorder %s4506_s30, 0 }
  0xce   : > { %v491_v26 = vpack.c.bf16 %v4231_v21, %v4231_v21  ;;  %v3443_v30 = vld [vmem:[#allocation10 + $0x88] sm:$0xff]   ;;  %v3447_v32 = vld [vmem:[#allocation10 + $0x90] sm:$0xff]   ;;  %v3449_v33 = vld [vmem:[#allocation10 + $0xd8] sm:$0xff]   ;;  %s3904_s22 = smov [#allocation15]  }
  0xcf   : > { %3207 = vmatpush3.bf16.msra.mxu0 %v3430_v3  ;;  %v3451_v34 = vld [vmem:[#allocation10 + $0x98] sm:$0xff]   ;;  %v3453_v35 = vld [vmem:[#allocation10 + $0xe0] sm:$0xff]   ;;  %v3457_v37 = vld [vmem:[#allocation10 + $0xe8] sm:$0xff]   ;;  %p3784_p5 = pnand %p3783_p11, %p4517_p13  ;;  %s3786_s14 = sshll.u32 %s3904_s22, 4  ;;  %s3787_s14 = int_to_ptr.vmem [resolvable:$false] %s3786_s14 }
  0xd0   : > { %3208 = vmatprep.subr.bf16.mxu0 %v3902_v0  ;;  %2986 = vmatpush3.bf16.msra.mxu1 %v3446_v14  ;;  %v3455_v36 = vld [vmem:[#allocation10 + $0xa0] sm:$0xff]   ;;  %v3459_v38 = vld [vmem:[#allocation10 + $0xa8] sm:$0xff]   ;;  %v3460_v39 = vld [vmem:[#allocation10 + $0x70] sm:$0xff]   ;;  %s3788_s29 = scalar_lea.vmem %s3787_s14, 256  ;;  %p3789_p4 = scmp.lt.s32.totalorder %s4397_s26, %s3787_s14 }
  0xd1   : > { %2987 = vmatprep.subr.bf16.mxu1 %v3448_v17  ;;  %v3461_v40 = vld [vmem:[#allocation10 + $0xf0] sm:$0xff]   ;;  %v3464_v43 = vld [vmem:[#allocation10 + $0x78] sm:$0xff]   ;;  %v3468_v47 = vld [vmem:[#allocation12 + $0x40] sm:$0xff]   ;;  %s4395_s11 = scalar_lea.hbm %s4516_s27, %s4494_s24  ;;  %p3785_p7 = pneg %p3784_p5 }
  0xd2   : > { %v3462_v41 = vld [vmem:[#allocation10 + $0x30] sm:$0xff]   ;;  %v3465_v44 = vld [vmem:[#allocation10 + $0xf8] sm:$0xff]   ;;  %v3470_v6 = vld [vmem:[#allocation12] sm:$0xff]   ;;  %p3790_p1 = scmp.lt.s32.totalorder %s3788_s29, %s3782_s28 }
  0xd3   : > { %3209 = vmatpush3.bf16.msra.mxu0 %v3431_v5  ;;  %v3463_v42 = vld [vmem:[#allocation10 + $0xb0] sm:$0xff]   ;;  %v3466_v45 = vld [vmem:[#allocation10 + $0x38] sm:$0xff]   ;;  %v3469_v5 = vld [vmem:[#allocation10 + $0x100] sm:$0xff]  }
  0xd4   : > { %3210 = vmatprep.subr.bf16.mxu0 %v3902_v0  ;;  %2988 = vmatpush3.bf16.msra.mxu1 %v3450_v19  ;;  %v3467_v46 = vld [vmem:[#allocation10 + $0xb8] sm:$0xff]   ;;  %v2780_v49 = vld [vmem:[%s4480_s3] ss:$0 sm:$0xff]  ;;  %v3472_v9 = vld [vmem:[#allocation10 + $0x108] sm:$0xff]   ;;  %p3791_p3 = por %p3790_p1, %p3789_p4 }
  0xd5   : > { %2989 = vmatprep.subr.bf16.mxu1 %v3452_v22  ;;  %v3474_v11 = vld [vmem:[#allocation12 + $0x50] sm:$0xff]   ;;  %v3477_v14 = vld [vmem:[#allocation12 + $0x58] sm:$0xff]   ;;  %v3480_v17 = vld [vmem:[#allocation12 + $0x60] sm:$0xff]  }
  0xd6   : > { %v3475_v12 = vld [vmem:[#allocation10 + $0x110] sm:$0xff]   ;;  %v3478_v15 = vld [vmem:[#allocation10 + $0x118] sm:$0xff]   ;;  %v3482_v19 = vld [vmem:[#allocation12 + $0x20] sm:$0xff]   ;;  %p3792_p9 = pnand %p3791_p3, %p3785_p7 }
  0xd7   : > { %3211 = vmatpush3.bf16.msra.mxu0 %v3432_v8  ;;  %v3471_v8 = vld [vmem:[#allocation12 + $0x48] sm:$0xff]   ;;  %v3476_v13 = vld [vmem:[#allocation12 + $0x10] sm:$0xff]   ;;  %v3479_v16 = vld [vmem:[#allocation12 + $0x18] sm:$0xff]  }
  0xd8   : > { %3212 = vmatprep.subr.bf16.mxu0 %v3902_v0  ;;  %2990 = vmatpush3.bf16.msra.mxu1 %v3454_v24  ;;  %v3484_v22 = vld [vmem:[#allocation10 + $0x128] sm:$0xff]   ;;  %v3486_v24 = vld [vmem:[#allocation12 + $0x70] sm:$0xff]   ;;  %v3506_v48 = vld [vmem:[#allocation12 + $0x120] sm:$0xff]  }
  0xd9   : > { %2991 = vmatprep.subr.bf16.mxu1 %v3456_v27  ;;  %v3489_v27 = vld [vmem:[#allocation12 + $0x78] sm:$0xff]   ;;  %v3577_v50 = vld [vmem:[#allocation12 + $0x248] sm:$0xff]  }
  0xdb   : > { %3213 = vmatpush3.bf16.msra.mxu0 %v3433_v10  ;;  %v3473_v10 = vld [vmem:[#allocation12 + $0x8] sm:$0xff]  }
  0xdc   : > { %3214 = vmatprep.subr.bf16.mxu0 %v3902_v0  ;;  %2992 = vmatpush3.bf16.msra.mxu1 %v3458_v29  ;;  %v4289_v29 = vrot.slane %v3902_v0, 2 }
  0xdd   : > { %2993 = vmatprep.subr.bf16.mxu1 %v3460_v39  ;;  %v3497_v39 = vld [vmem:[#allocation12 + $0x108] sm:$0xff]  }
  0xdf   : > { %3215 = vmatpush3.bf16.msra.mxu0 %v3434_v18  ;;  %v3481_v18 = vld [vmem:[#allocation10 + $0x120] sm:$0xff]  }
  0xe0   : > { %3216 = vmatprep.subr.bf16.mxu0 %v3902_v0  ;;  %2994 = vmatpush3.bf16.msra.mxu1 %v3462_v41  ;;  %v3499_v41 = vld [vmem:[#allocation12 + $0x90] sm:$0xff]  }
  0xe1   : > { %2995 = vmatprep.subr.bf16.mxu1 %v3464_v43  ;;  %v3501_v43 = vld [vmem:[#allocation12 + $0xd8] sm:$0xff]  }
  0xe3   : > { %3217 = vmatpush3.bf16.msra.mxu0 %v3435_v20  ;;  %v3483_v20 = vld [vmem:[#allocation12 + $0x68] sm:$0xff]  }
  0xe4   : > { %3003 = vmatprep.subr.bf16.mxu0 %v3437_v23  ;;  %2996 = vmatpush3.bf16.msra.mxu1 %v3466_v45  ;;  %v3485_v23 = vld [vmem:[#allocation12 + $0x28] sm:$0xff]   ;;  %v3503_v45 = vld [vmem:[#allocation12 + $0x118] sm:$0xff]  }
  0xe5   : > { %3222 = vmatprep.subr.bf16.mxu1 %v3902_v0 }
  0xe6   : > { %3219 = vmatmul.mubr.bf16.vlgmr.msra.gmra.mrb[0].mxu0 %v491_v26  ;;  %v3488_v26 = vld [vmem:[#allocation12 + $0x30] sm:$0xff]  }
  0xe7   : > { %3004 = vmatpush3.bf16.msra.mxu0 %v3439_v25  ;;  %v3487_v25 = vld [vmem:[#allocation10 + $0x130] sm:$0xff]  }
  0xe8   : > { %3005 = vmatprep.subr.bf16.mxu0 %v3441_v28 }
  0xeb   : > { %3006 = vmatpush3.bf16.msra.mxu0 %v3443_v30  ;;  %v3490_v30 = vld [vmem:[#allocation10 + $0x138] sm:$0xff]  }
  0xec   : > { %3007 = vmatprep.subr.bf16.mxu0 %v3445_v31  ;;  %v3491_v31 = vld [vmem:[#allocation12 + $0x38] sm:$0xff]  }
  0xef   : > { %3008 = vmatpush3.bf16.msra.mxu0 %v3447_v32  ;;  %v3492_v32 = vld [vmem:[#allocation12 + $0xc0] sm:$0xff]  }
  0xf0   : > { %3009 = vmatprep.subr.bf16.mxu0 %v3449_v33 }
  0xf3   : > { %3010 = vmatpush3.bf16.msra.mxu0 %v3451_v34  ;;  %v3493_v34 = vld [vmem:[#allocation12 + $0x80] sm:$0xff]  }
  0xf4   : > { %3011 = vmatprep.subr.bf16.mxu0 %v3453_v35 }
  0xf7   : > { %3012 = vmatpush3.bf16.msra.mxu0 %v3455_v36  ;;  %v3494_v36 = vld [vmem:[#allocation12 + $0x100] sm:$0xff]  }
  0xf8   : > { %3013 = vmatprep.subr.bf16.mxu0 %v3457_v37  ;;  %v3495_v37 = vld [vmem:[#allocation12 + $0xc8] sm:$0xff]  }
  0xfb   : > { %3014 = vmatpush3.bf16.msra.mxu0 %v3459_v38  ;;  %v3496_v38 = vld [vmem:[#allocation12 + $0x88] sm:$0xff]  }
  0xfc   : > { %3015 = vmatprep.subr.bf16.mxu0 %v3461_v40  ;;  %v3498_v40 = vld [vmem:[#allocation12 + $0xd0] sm:$0xff]  }
  0xff   : > { %3016 = vmatpush3.bf16.msra.mxu0 %v3463_v42  ;;  %v3500_v42 = vld [vmem:[#allocation12 + $0x110] sm:$0xff]  }
 0x100   : > { %3017 = vmatprep.subr.bf16.mxu0 %v3465_v44  ;;  %v3502_v44 = vld [vmem:[#allocation12 + $0x98] sm:$0xff]  }
 0x103   : > { %3018 = vmatpush3.bf16.msra.mxu0 %v3467_v46  ;;  %v3504_v46 = vld [vmem:[#allocation12 + $0xe0] sm:$0xff]  }
 0x104   : > { %3034 = vmatprep.subr.bf16.mxu0 %v3468_v47  ;;  %v3505_v47 = vld [vmem:[#allocation12 + $0xa0] sm:$0xff]  }
 0x1b9   : > { %v597_v51 = vpop.f32.mrb[0].mxu0 }
 0x1ba   : > { %v4242_v52 = vadd.f32 %v2780_v49, %v597_v51  ;;  %v3220_v53 = vpop.f32.mrb[1].mxu0  ;;  %v3507_v49 = vld [vmem:[#allocation12 + $0xe8] sm:$0xff]  }
 0x1bb   : > { %v600_v57 = vpop.f32.mrb[2].mxu0  ;;  %v3508_v51 = vld [vmem:[#allocation12 + $0xa8] sm:$0xff]  }
 0x1bc   : > { %v3221_v58 = vpop.f32.mrb[3].mxu0  ;;  %v613_v59 = vrot.slane %v4242_v52, 7  ;;  %v617_v60 = vrot.slane %v4242_v52, 1  ;;  %v607_v61 = vrot.slane %v4242_v52, 6  ;;  %v4274_v7 = vpack.c.bf16 %v4242_v52, %v4242_v52  ;;  %v3509_v53 = vld [vmem:[#allocation12 + $0x128] sm:$0xff]   ;;  %v3510_v57 = vld [vmem:[#allocation12 + $0xf0] sm:$0xff]  }
 0x1bd   : > { %v621_v28 = vrot.slane %v4242_v52, 2  ;;  %v3511_v58 = vld [vmem:[#allocation12 + $0xb0] sm:$0xff]  }
 0x1be   : > { %v616_v62 = vsel %vm615_vm1, %v4245_v54, %v613_v59  ;;  %v620_v63 = vsel %vm619_vm2, %v617_v60, %v4248_v55  ;;  %v612_v1 = vsel %vm611_vm3, %v4251_v56, %v607_v61  ;;  %v3512_v59 = vld [vmem:[#allocation12 + $0x130] sm:$0xff]   ;;  %v3513_v60 = vld [vmem:[#allocation12 + $0xf8] sm:$0xff]  }
 0x1bf   : > { %v626_v2 = vpack.c.bf16 %v616_v62, %v616_v62  ;;  %v4268_v3 = vpack.c.bf16 %v620_v63, %v620_v63  ;;  %v4270_v4 = vpack.c.bf16 %v612_v1, %v612_v1  ;;  %v624_v33 = vsel %vm623_vm4, %v621_v28, %v4289_v29  ;;  %v3514_v61 = vld [vmem:[#allocation12 + $0xb8] sm:$0xff]   ;;  %v3516_v63 = vld [vmem:[#allocation10 + $0x180] sm:$0xff]   ;;  %v3543_v28 = vld [vmem:[#allocation10 + $0x1f0] sm:$0xff]  }
 0x1c0   : > { %v629_v35 = vpack.c.bf16 %v624_v33, %v624_v33  ;;  %v3515_v62 = vld [vmem:[#allocation12 + $0x138] sm:$0xff]   ;;  %v3517_v1 = vld [vmem:[#allocation10 + $0x200] sm:$0xff]  }
 0x1c1   : > { %989 = vmatprep.mubr.bf16.mxu1 %v626_v2  ;;  %1029 = vmatprep.mubr.bf16.mxu0 %v4268_v3  ;;  %v3547_v33 = vld [vmem:[#allocation10 + $0x1f8] sm:$0xff]  }
 0x1c2   : > { %990 = vmatmul.mubr.bf16.vlgmr.msra.gmra.mrb[0].mxu1 %v4270_v4  ;;  %1030 = vmatmul.mubr.bf16.vlgmr.msra.gmra.mrb[4].mxu0 %v4274_v7 }
 0x1c3   : > { %3223 = vmatpush3.bf16.msra.mxu1 %v3469_v5  ;;  %3035 = vmatpush3.bf16.msra.mxu0 %v3470_v6  ;;  %v3521_v5 = vld [vmem:[#allocation10 + $0x208] sm:$0xff]  }
 0x1c4   : > { %1436 = vmatprep.mubr.bf16.mxu0 %v626_v2  ;;  %3224 = vmatprep.subr.bf16.mxu1 %v3902_v0  ;;  %v3518_v2 = vld [vmem:[#allocation10 + $0x140] sm:$0xff]   ;;  %v3522_v6 = vld [vmem:[#allocation10 + $0x148] sm:$0xff]  }
 0x1c5   : > { %3036 = vmatprep.subr.bf16.mxu0 %v3471_v8  ;;  %3238 = vmatprep.mubr.msk.bf16.mxu1 %vm3903_vm0, %v3902_v0  ;;  %v3523_v8 = vld [vmem:[#allocation10 + $0x1c8] sm:$0xff]  }
 0x1c7   : > { %3225 = vmatpush3.bf16.msra.mxu1 %v3472_v9  ;;  %3037 = vmatpush3.bf16.msra.mxu0 %v3473_v10  ;;  %v3524_v9 = vld [vmem:[#allocation10 + $0x190] sm:$0xff]  }
 0x1c8   : > { %3226 = vmatprep.subr.bf16.mxu1 %v3902_v0  ;;  %3038 = vmatprep.subr.bf16.mxu0 %v3474_v11  ;;  %v3525_v10 = vld [vmem:[#allocation10 + $0x210] sm:$0xff]  }
 0x1c9   : > { %v3527_v11 = vld [vmem:[#allocation10 + $0x1d0] sm:$0xff]  }
 0x1cb   : > { %3227 = vmatpush3.bf16.msra.mxu1 %v3475_v12  ;;  %3039 = vmatpush3.bf16.msra.mxu0 %v3476_v13  ;;  %v3528_v12 = vld [vmem:[#allocation10 + $0x198] sm:$0xff]  }
 0x1cc   : > { %3228 = vmatprep.subr.bf16.mxu1 %v3902_v0  ;;  %3040 = vmatprep.subr.bf16.mxu0 %v3477_v14  ;;  %v3529_v13 = vld [vmem:[#allocation10 + $0x218] sm:$0xff]  }
 0x1cd   : > { %v3530_v14 = vld [vmem:[#allocation10 + $0x158] sm:$0xff]  }
 0x1cf   : > { %3229 = vmatpush3.bf16.msra.mxu1 %v3478_v15  ;;  %3041 = vmatpush3.bf16.msra.mxu0 %v3479_v16  ;;  %v3531_v15 = vld [vmem:[#allocation10 + $0x1d8] sm:$0xff]   ;;  %v3532_v16 = vld [vmem:[#allocation10 + $0x1a0] sm:$0xff]  }
 0x1d0   : > { %3230 = vmatprep.subr.bf16.mxu1 %v3902_v0  ;;  %3042 = vmatprep.subr.bf16.mxu0 %v3480_v17  ;;  %v3533_v17 = vld [vmem:[#allocation10 + $0x220] sm:$0xff]  }
 0x1d3   : > { %3231 = vmatpush3.bf16.msra.mxu1 %v3481_v18  ;;  %3043 = vmatpush3.bf16.msra.mxu0 %v3482_v19  ;;  %v3534_v18 = vld [vmem:[#allocation10 + $0x160] sm:$0xff]  }
 0x1d4   : > { %3232 = vmatprep.subr.bf16.mxu1 %v3902_v0  ;;  %3044 = vmatprep.subr.bf16.mxu0 %v3483_v20  ;;  %v3535_v19 = vld [vmem:[#allocation10 + $0x1e0] sm:$0xff]   ;;  %v3536_v20 = vld [vmem:[#allocation10 + $0x1a8] sm:$0xff]  }
 0x1d7   : > { %3233 = vmatpush3.bf16.msra.mxu1 %v3484_v22  ;;  %3045 = vmatpush3.bf16.msra.mxu0 %v3485_v23  ;;  %v3537_v22 = vld [vmem:[#allocation10 + $0x228] sm:$0xff]  }
 0x1d8   : > { %3234 = vmatprep.subr.bf16.mxu1 %v3902_v0  ;;  %3046 = vmatprep.subr.bf16.mxu0 %v3486_v24  ;;  %v3538_v23 = vld [vmem:[#allocation10 + $0x168] sm:$0xff]  }
 0x1d9   : > { %v3539_v24 = vld [vmem:[#allocation10 + $0x1e8] sm:$0xff]  }
 0x1db   : > { %3235 = vmatpush3.bf16.msra.mxu1 %v3487_v25  ;;  %3047 = vmatpush3.bf16.msra.mxu0 %v3488_v26  ;;  %v3540_v25 = vld [vmem:[#allocation10 + $0x1b0] sm:$0xff]  }
 0x1dc   : > { %3236 = vmatprep.subr.bf16.mxu1 %v3902_v0  ;;  %3048 = vmatprep.subr.bf16.mxu0 %v3489_v27  ;;  %v3541_v26 = vld [vmem:[#allocation10 + $0x230] sm:$0xff]  }
 0x1dd   : > { %v3542_v27 = vld [vmem:[#allocation10 + $0x170] sm:$0xff]  }
 0x1df   : > { %3237 = vmatpush3.bf16.msra.mxu1 %v3490_v30  ;;  %3049 = vmatpush3.bf16.msra.mxu0 %v3491_v31  ;;  %v3544_v30 = vld [vmem:[#allocation10 + $0x1b8] sm:$0xff]  }
 0x1e0   : > { %3056 = vmatprep.subr.bf16.mxu1 %v3492_v32  ;;  %3242 = vmatprep.subr.bf16.mxu0 %v3902_v0  ;;  %v3545_v31 = vld [vmem:[#allocation10 + $0x238] sm:$0xff]  }
 0x1e1   : > { %v3546_v32 = vld [vmem:[#allocation10 + $0x178] sm:$0xff]  }
 0x1e2   : > { %3239 = vmatmul.mubr.bf16.vlgmr.msra.gmra.mrb[4].mxu1 %v629_v35  ;;  %1437 = vmatmul.mubr.bf16.vlgmr.msra.gmra.mrb[8].mxu0 %v4270_v4  ;;  %v3520_v4 = vld [vmem:[#allocation10 + $0x188] sm:$0xff]  }
 0x1e3   : > { %3057 = vmatpush3.bf16.msra.mxu1 %v3493_v34  ;;  %1476 = vmatprep.mubr.bf16.mxu1 %v4268_v3  ;;  %v3519_v3 = vld [vmem:[#allocation10 + $0x1c0] sm:$0xff]  }
 0x1e4   : > { %3243 = vmatpush3.bf16.msra.mxu0 %v3494_v36  ;;  %3058 = vmatprep.subr.bf16.mxu1 %v3495_v37  ;;  %v3548_v34 = vld [vmem:[#allocation12 + $0x180] sm:$0xff]   ;;  %v2789_v37 = vld [vmem:[%s4482_s5] ss:$0 sm:$0xff] }
 0x1e5   : > { %3244 = vmatprep.subr.bf16.mxu0 %v3902_v0  ;;  %3258 = vmatprep.mubr.msk.bf16.mxu0 %vm3903_vm0, %v3902_v0 }
 0x1e7   : > { %3059 = vmatpush3.bf16.msra.mxu1 %v3496_v38 }
 0x1e8   : > { %3245 = vmatpush3.bf16.msra.mxu0 %v3497_v39  ;;  %3060 = vmatprep.subr.bf16.mxu1 %v3498_v40 }
 0x1e9   : > { %3246 = vmatprep.subr.bf16.mxu0 %v3902_v0 }
 0x1eb   : > { %3061 = vmatpush3.bf16.msra.mxu1 %v3499_v41 }
 0x1ec   : > { %3247 = vmatpush3.bf16.msra.mxu0 %v3500_v42  ;;  %3062 = vmatprep.subr.bf16.mxu1 %v3501_v43 }
 0x1ed   : > { %3248 = vmatprep.subr.bf16.mxu0 %v3902_v0 }
 0x1ef   : > { %3063 = vmatpush3.bf16.msra.mxu1 %v3502_v44 }
 0x1f0   : > { %3249 = vmatpush3.bf16.msra.mxu0 %v3503_v45  ;;  %3064 = vmatprep.subr.bf16.mxu1 %v3504_v46 }
 0x1f1   : > { %3250 = vmatprep.subr.bf16.mxu0 %v3902_v0 }
 0x1f3   : > { %3065 = vmatpush3.bf16.msra.mxu1 %v3505_v47 }
 0x1f4   : > { %3251 = vmatpush3.bf16.msra.mxu0 %v3506_v48  ;;  %3066 = vmatprep.subr.bf16.mxu1 %v3507_v49 }
 0x1f5   : > { %3252 = vmatprep.subr.bf16.mxu0 %v3902_v0 }
 0x1f7   : > { %3067 = vmatpush3.bf16.msra.mxu1 %v3508_v51 }
 0x1f8   : > { %3253 = vmatpush3.bf16.msra.mxu0 %v3509_v53  ;;  %3068 = vmatprep.subr.bf16.mxu1 %v3510_v57 }
 0x1f9   : > { %3254 = vmatprep.subr.bf16.mxu0 %v3902_v0 }
 0x1fb   : > { %3069 = vmatpush3.bf16.msra.mxu1 %v3511_v58 }
 0x1fc   : > { %3255 = vmatpush3.bf16.msra.mxu0 %v3512_v59  ;;  %3070 = vmatprep.subr.bf16.mxu1 %v3513_v60 }
 0x1fd   : > { %3256 = vmatprep.subr.bf16.mxu0 %v3902_v0 }
 0x1ff   : > { %3071 = vmatpush3.bf16.msra.mxu1 %v3514_v61 }
 0x200   : > { %3257 = vmatpush3.bf16.msra.mxu0 %v3515_v62  ;;  %3087 = vmatprep.subr.bf16.mxu1 %v3516_v63  ;;  %v2830_v63 = vld [vmem:[%s4484_s7] ss:$0 sm:$0xff] }
 0x201   : > { %3109 = vmatprep.subr.bf16.mxu0 %v3517_v1 }
 0x202   : > { %1477 = vmatmul.mubr.bf16.vlgmr.msra.gmra.mrb[8].mxu1 %v4274_v7  ;;  %v3526_v7 = vld [vmem:[#allocation10 + $0x150] sm:$0xff]  }
 0x203   : > { %3259 = vmatmul.mubr.bf16.vlgmr.msra.gmra.mrb[12].mxu0 %v629_v35  ;;  %3088 = vmatpush3.bf16.msra.mxu1 %v3518_v2 }
 0x204   : > { %3110 = vmatpush3.bf16.msra.mxu0 %v3519_v3  ;;  %3089 = vmatprep.subr.bf16.mxu1 %v3520_v4 }
 0x205   : > { %3111 = vmatprep.subr.bf16.mxu0 %v3521_v5 }
 0x207   : > { %3090 = vmatpush3.bf16.msra.mxu1 %v3522_v6 }
 0x208   : > { %3112 = vmatpush3.bf16.msra.mxu0 %v3523_v8  ;;  %3091 = vmatprep.subr.bf16.mxu1 %v3524_v9 }
 0x209   : > { %3113 = vmatprep.subr.bf16.mxu0 %v3525_v10 }
 0x20b   : > { %3092 = vmatpush3.bf16.msra.mxu1 %v3526_v7 }
 0x20c   : > { %3114 = vmatpush3.bf16.msra.mxu0 %v3527_v11  ;;  %3093 = vmatprep.subr.bf16.mxu1 %v3528_v12 }
 0x20d   : > { %3115 = vmatprep.subr.bf16.mxu0 %v3529_v13 }
 0x20f   : > { %3094 = vmatpush3.bf16.msra.mxu1 %v3530_v14 }
 0x210   : > { %3116 = vmatpush3.bf16.msra.mxu0 %v3531_v15  ;;  %3095 = vmatprep.subr.bf16.mxu1 %v3532_v16 }
 0x211   : > { %3117 = vmatprep.subr.bf16.mxu0 %v3533_v17 }
 0x213   : > { %3096 = vmatpush3.bf16.msra.mxu1 %v3534_v18 }
 0x214   : > { %3118 = vmatpush3.bf16.msra.mxu0 %v3535_v19  ;;  %3097 = vmatprep.subr.bf16.mxu1 %v3536_v20 }
 0x215   : > { %3119 = vmatprep.subr.bf16.mxu0 %v3537_v22 }
 0x217   : > { %3098 = vmatpush3.bf16.msra.mxu1 %v3538_v23 }
 0x218   : > { %3120 = vmatpush3.bf16.msra.mxu0 %v3539_v24  ;;  %3099 = vmatprep.subr.bf16.mxu1 %v3540_v25 }
 0x219   : > { %3121 = vmatprep.subr.bf16.mxu0 %v3541_v26 }
 0x21b   : > { %3100 = vmatpush3.bf16.msra.mxu1 %v3542_v27 }
 0x21c   : > { %3122 = vmatpush3.bf16.msra.mxu0 %v3543_v28  ;;  %3101 = vmatprep.subr.bf16.mxu1 %v3544_v30  ;;  %v3549_v30 = vld [vmem:[#allocation10 + $0x240] sm:$0xff]  }
 0x21d   : > { %3123 = vmatprep.subr.bf16.mxu0 %v3545_v31  ;;  %v3550_v31 = vld [vmem:[#allocation12 + $0x140] sm:$0xff]  }
 0x21f   : > { %3102 = vmatpush3.bf16.msra.mxu1 %v3546_v32 }
 0x220   : > { %3124 = vmatpush3.bf16.msra.mxu0 %v3547_v33  ;;  %3262 = vmatprep.subr.bf16.mxu1 %v3902_v0  ;;  %v3554_v33 = vld [vmem:[#allocation12 + $0x190] sm:$0xff]  }
 0x221   : > { %3140 = vmatprep.subr.bf16.mxu0 %v3548_v34  ;;  %v3555_v34 = vld [vmem:[#allocation10 + $0x250] sm:$0xff]  }
 0x295   : > { %v2997_v35 = vpop.f32.mrb[0].mxu1  ;;  %v3019_v36 = vpop.f32.mrb[4].mxu0 }
 0x296   : > { %v2998_v38 = vpop.f32.mrb[1].mxu1  ;;  %v3020_v39 = vpop.f32.mrb[5].mxu0 }
 0x297   : > { %v2999_v40 = vadd.f32 %v2998_v38, %v2997_v35  ;;  %v3021_v41 = vadd.f32 %v3020_v39, %v3019_v36  ;;  %v3000_v42 = vpop.f32.mrb[2].mxu1  ;;  %v3022_v43 = vpop.f32.mrb[6].mxu0  ;;  %v3556_v35 = vld [vmem:[#allocation12 + $0x150] sm:$0xff]   ;;  %v3557_v36 = vld [vmem:[#allocation12 + $0x198] sm:$0xff]   ;;  %v3560_v39 = vld [vmem:[#allocation12 + $0x1a0] sm:$0xff]  }
 0x298   : > { %v3001_v44 = vpop.f32.mrb[3].mxu1  ;;  %v3023_v45 = vpop.f32.mrb[7].mxu0  ;;  %v3559_v38 = vld [vmem:[#allocation12 + $0x158] sm:$0xff]   ;;  %v3563_v42 = vld [vmem:[#allocation12 + $0x1a8] sm:$0xff]  }
 0x299   : > { %v992_v46 = vadd.f32 %v2999_v40, %v2789_v37  ;;  %v3558_v37 = vld [vmem:[#allocation10 + $0x258] sm:$0xff]   ;;  %v3561_v40 = vld [vmem:[#allocation10 + $0x260] sm:$0xff]   ;;  %v3564_v43 = vld [vmem:[#allocation10 + $0x268] sm:$0xff]  }
 0x29a   : > { %v3565_v44 = vld [vmem:[#allocation12 + $0x168] sm:$0xff]   ;;  %v3566_v45 = vld [vmem:[#allocation12 + $0x1b0] sm:$0xff]  }
 0x29b   : > { %v1032_v47 = vadd.f32 %v3021_v41, %v992_v46  ;;  %v3562_v41 = vld [vmem:[#allocation12 + $0x160] sm:$0xff]   ;;  %v3567_v46 = vld [vmem:[#allocation10 + $0x270] sm:$0xff]  }
 0x2b5   : > { %v1071_v48 = vpop.f32.mrb[4].mxu1  ;;  %v3050_v49 = vpop.f32.mrb[8].mxu0 }
 0x2b6   : > { %v1072_v51 = vadd.f32 %v1071_v48, %v1032_v47  ;;  %v3240_v53 = vpop.f32.mrb[5].mxu1  ;;  %v3051_v57 = vpop.f32.mrb[9].mxu0  ;;  %v3568_v47 = vld [vmem:[#allocation12 + $0x170] sm:$0xff]   ;;  %v3569_v48 = vld [vmem:[#allocation12 + $0x1b8] sm:$0xff]  }
 0x2b7   : > { %v3052_v58 = vadd.f32 %v3051_v57, %v3050_v49  ;;  %v1074_v59 = vpop.f32.mrb[6].mxu1  ;;  %v3053_v60 = vpop.f32.mrb[10].mxu0  ;;  %v3571_v53 = vld [vmem:[#allocation12 + $0x178] sm:$0xff]   ;;  %v3572_v57 = vld [vmem:[#allocation12 + $0x200] sm:$0xff]  }
 0x2b8   : > { %v3241_v61 = vpop.f32.mrb[7].mxu1  ;;  %v3054_v62 = vpop.f32.mrb[11].mxu0  ;;  %v3573_v59 = vld [vmem:[#allocation12 + $0x1c0] sm:$0xff]  }
 0x2b9   : > { %v1439_v4 = vadd.f32 %v3052_v58, %v2830_v63  ;;  %v3574_v61 = vld [vmem:[#allocation12 + $0x240] sm:$0xff]   ;;  %v3575_v62 = vld [vmem:[#allocation12 + $0x208] sm:$0xff]  }
 0x2ba   : > { %v3576_v63 = vld [vmem:[#allocation12 + $0x1c8] sm:$0xff]  }
 0x2d5   : > { %v3072_v1 = vpop.f32.mrb[8].mxu1 }
 0x2d6   : > { %v1518_v2 = vpop.f32.mrb[12].mxu0  ;;  %v3073_v3 = vpop.f32.mrb[9].mxu1 }
 0x2d7   : > { %v3074_v5 = vadd.f32 %v3073_v3, %v3072_v1  ;;  %v3260_v6 = vpop.f32.mrb[13].mxu0  ;;  %v3075_v8 = vpop.f32.mrb[10].mxu1  ;;  %v3579_v1 = vld [vmem:[#allocation12 + $0x1d0] sm:$0xff]   ;;  %v3581_v3 = vld [vmem:[#allocation12 + $0x218] sm:$0xff]  }
 0x2d8   : > { %v1521_v9 = vpop.f32.mrb[14].mxu0  ;;  %v3076_v10 = vpop.f32.mrb[11].mxu1  ;;  %v3584_v6 = vld [vmem:[#allocation12 + $0x220] sm:$0xff]  }
 0x2d9   : > { %v1479_v7 = vadd.f32 %v3074_v5, %v1439_v4  ;;  %v3261_v11 = vpop.f32.mrb[15].mxu0  ;;  %v3582_v4 = vld [vmem:[#allocation12 + $0x1d8] sm:$0xff]   ;;  %v3585_v8 = vld [vmem:[#allocation12 + $0x1e0] sm:$0xff]   ;;  %v3587_v10 = vld [vmem:[#allocation12 + $0x228] sm:$0xff]  }
 0x2da   : > { %v3583_v5 = vld [vmem:[#allocation12 + $0x258] sm:$0xff]   ;;  %v3586_v9 = vld [vmem:[#allocation12 + $0x260] sm:$0xff]   ;;  %v3589_v11 = vld [vmem:[#allocation12 + $0x268] sm:$0xff]  }
 0x2db   : > { %v1519_v12 = vadd.f32 %v1518_v2, %v1479_v7  ;;  %v3580_v2 = vld [vmem:[#allocation12 + $0x250] sm:$0xff]   ;;  %v3588_v7 = vld [vmem:[#allocation12 + $0x1e8] sm:$0xff]  }
 0x2dd   : > { %v2871_v13 = vmul.f32 -1.442695, %v1519_v12  ;;  %v3590_v12 = vld [vmem:[#allocation12 + $0x230] sm:$0xff]  }
 0x2df   : > { %3604 = vpow2.f32 %v2871_v13  ;;  %v3591_v13 = vld [vmem:[#allocation12 + $0x1f0] sm:$0xff]  }
 0x2e9   : > { %v3605_v14 = vpop.eup %3604 }
 0x2ea   : > { %v1527_v15 = vadd.f32 1.0, %v3605_v14  ;;  %v3592_v14 = vld [vmem:[#allocation12 + $0x270] sm:$0xff]  }
 0x2ec   : > { %3606 = vrcp.f32 %v1527_v15  ;;  %v3593_v15 = vld [vmem:[#allocation12 + $0x238] sm:$0xff]  }
 0x2f6   : > { %v3607_v16 = vpop.eup %3606 }
 0x2f7   : > { %v1530_v17 = vmul.f32 %v3607_v16, %v1072_v51  ;;  %v3570_v51 = vld [vmem:[#allocation10 + $0x278] sm:$0xff]  }
 0x2f8   : > { %v3594_v16 = vld [vmem:[#allocation12 + $0x1f8] sm:$0xff]  }
 0x2f9   : > { %v1531_v18 = vadd.f32 %v1530_v17, %v4242_v52  ;;  %v3595_v17 = vld [vmem:[#allocation12 + $0x278] sm:$0xff]  }
 0x2fb   : > { %v4317_v19 = vmul.f32 0.70710677, %v1531_v18  ;;  %v3596_v18 = vld [vmem:[#allocation13] sm:$0xff]  }
 0x2fd   : > { %v1539_v20 = vrot.slane %v4317_v19, 7  ;;  %v1542_v22 = vrot.slane %v4317_v19, 1  ;;  %v1536_v23 = vrot.slane %v4317_v19, 6  ;;  %v4337_v32 = vpack.c.bf16 %v4317_v19, %v4317_v19 }
 0x2fe   : > { %v1545_v49 = vrot.slane %v4317_v19, 2 }
 0x2ff   : > { %v1541_v24 = vsel %vm615_vm1, %v4245_v54, %v1539_v20  ;;  %v1544_v25 = vsel %vm619_vm2, %v1542_v22, %v4248_v55  ;;  %v1538_v52 = vsel %vm611_vm3, %v4251_v56, %v1536_v23  ;;  %v3551_v54 = vld [vmem:[#allocation12 + $0x188] sm:$0xff]   ;;  %v3598_v22 = vld [vmem:[#allocation13 + $0x10] sm:$0xff]   ;;  %v3599_v23 = vld [vmem:[#allocation13 + $0x18] sm:$0xff]  }
 0x300   : > { %v1549_v26 = vpack.c.bf16 %v1541_v24, %v1541_v24  ;;  %v4331_v27 = vpack.c.bf16 %v1544_v25, %v1544_v25  ;;  %v4333_v28 = vpack.c.bf16 %v1538_v52, %v1538_v52  ;;  %v3552_v55 = vld [vmem:[#allocation10 + $0x248] sm:$0xff]   ;;  %v1547_v58 = vsel %vm623_vm4, %v1545_v49, %v4289_v29  ;;  %v3578_v29 = vld [vmem:[#allocation12 + $0x210] sm:$0xff]   ;;  %v3600_v24 = vld [vmem:[#allocation13 + $0x20] sm:$0xff]  }
 0x301   : > { %v3553_v56 = vld [vmem:[#allocation12 + $0x148] sm:$0xff]   ;;  %v1552_v60 = vpack.c.bf16 %v1547_v58, %v1547_v58  ;;  %v3602_v52 = vld [vmem:[#allocation13 + $0x30] sm:$0xff]  }
 0x302   : > { %1914 = vmatprep.mubr.bf16.mxu1 %v1549_v26  ;;  %1954 = vmatprep.mubr.bf16.mxu0 %v4331_v27  ;;  %v3597_v20 = vld [vmem:[#allocation13 + $0x8] sm:$0xff]  }
 0x303   : > { %1915 = vmatmul.mubr.bf16.vlgmr.msra.gmra.mrb[12].mxu1 %v4333_v28  ;;  %1955 = vmatmul.mubr.bf16.vlgmr.msra.gmra.mrb[16].mxu0 %v4337_v32  ;;  %v3601_v25 = vld [vmem:[#allocation13 + $0x28] sm:$0xff]  }
 0x304   : > { %3263 = vmatpush3.bf16.msra.mxu1 %v3549_v30  ;;  %3141 = vmatpush3.bf16.msra.mxu0 %v3550_v31  ;;  %v2873_v30 = vld [vmem:[%s4482_s5 + $0x1] ss:$0 sm:$0xff] }
 0x305   : > { %2363 = vmatprep.mubr.bf16.mxu0 %v1549_v26  ;;  %3264 = vmatprep.subr.bf16.mxu1 %v3902_v0  ;;  %v3603_v26 = vld [vmem:[#allocation13 + $0x38] sm:$0xff]  }
 0x306   : > { %3142 = vmatprep.subr.bf16.mxu0 %v3551_v54  ;;  %3278 = vmatprep.mubr.msk.bf16.mxu1 %vm3903_vm0, %v3902_v0 }
 0x308   : > { %3265 = vmatpush3.bf16.msra.mxu1 %v3552_v55  ;;  %3143 = vmatpush3.bf16.msra.mxu0 %v3553_v56 }
 0x309   : > { %3266 = vmatprep.subr.bf16.mxu1 %v3902_v0  ;;  %3144 = vmatprep.subr.bf16.mxu0 %v3554_v33 }
 0x30c   : > { %3267 = vmatpush3.bf16.msra.mxu1 %v3555_v34  ;;  %3145 = vmatpush3.bf16.msra.mxu0 %v3556_v35 }
 0x30d   : > { %3268 = vmatprep.subr.bf16.mxu1 %v3902_v0  ;;  %3146 = vmatprep.subr.bf16.mxu0 %v3557_v36 }
 0x310   : > { %3269 = vmatpush3.bf16.msra.mxu1 %v3558_v37  ;;  %3147 = vmatpush3.bf16.msra.mxu0 %v3559_v38 }
 0x311   : > { %3270 = vmatprep.subr.bf16.mxu1 %v3902_v0  ;;  %3148 = vmatprep.subr.bf16.mxu0 %v3560_v39 }
 0x314   : > { %3271 = vmatpush3.bf16.msra.mxu1 %v3561_v40  ;;  %3149 = vmatpush3.bf16.msra.mxu0 %v3562_v41 }
 0x315   : > { %3272 = vmatprep.subr.bf16.mxu1 %v3902_v0  ;;  %3150 = vmatprep.subr.bf16.mxu0 %v3563_v42 }
 0x318   : > { %3273 = vmatpush3.bf16.msra.mxu1 %v3564_v43  ;;  %3151 = vmatpush3.bf16.msra.mxu0 %v3565_v44 }
 0x319   : > { %3274 = vmatprep.subr.bf16.mxu1 %v3902_v0  ;;  %3152 = vmatprep.subr.bf16.mxu0 %v3566_v45 }
 0x31c   : > { %3275 = vmatpush3.bf16.msra.mxu1 %v3567_v46  ;;  %3153 = vmatpush3.bf16.msra.mxu0 %v3568_v47  ;;  %v2915_v47 = vld [vmem:[%s4484_s7 + $0x1] ss:$0 sm:$0xff] }
 0x31d   : > { %3276 = vmatprep.subr.bf16.mxu1 %v3902_v0  ;;  %3154 = vmatprep.subr.bf16.mxu0 %v3569_v48 }
 0x320   : > { %3277 = vmatpush3.bf16.msra.mxu1 %v3570_v51  ;;  %3155 = vmatpush3.bf16.msra.mxu0 %v3571_v53 }
 0x321   : > { %3162 = vmatprep.subr.bf16.mxu1 %v3572_v57  ;;  %3282 = vmatprep.subr.bf16.mxu0 %v3902_v0 }
 0x323   : > { %3279 = vmatmul.mubr.bf16.vlgmr.msra.gmra.mrb[16].mxu1 %v1552_v60  ;;  %2364 = vmatmul.mubr.bf16.vlgmr.msra.gmra.mrb[20].mxu0 %v4333_v28 }
 0x324   : > { %3163 = vmatpush3.bf16.msra.mxu1 %v3573_v59  ;;  %2403 = vmatprep.mubr.bf16.mxu1 %v4331_v27 }
 0x325   : > { %3283 = vmatpush3.bf16.msra.mxu0 %v3574_v61  ;;  %3164 = vmatprep.subr.bf16.mxu1 %v3575_v62 }
 0x326   : > { %3284 = vmatprep.subr.bf16.mxu0 %v3902_v0  ;;  %3298 = vmatprep.mubr.msk.bf16.mxu0 %vm3903_vm0, %v3902_v0 }
 0x328   : > { %3165 = vmatpush3.bf16.msra.mxu1 %v3576_v63 }
 0x329   : > { %3285 = vmatpush3.bf16.msra.mxu0 %v3577_v50  ;;  %3166 = vmatprep.subr.bf16.mxu1 %v3578_v29 }
 0x32a   : > { %3286 = vmatprep.subr.bf16.mxu0 %v3902_v0 }
 0x32c   : > { %3167 = vmatpush3.bf16.msra.mxu1 %v3579_v1 }
 0x32d   : > { %3287 = vmatpush3.bf16.msra.mxu0 %v3580_v2  ;;  %3168 = vmatprep.subr.bf16.mxu1 %v3581_v3 }
 0x32e   : > { %3288 = vmatprep.subr.bf16.mxu0 %v3902_v0 }
 0x330   : > { %3169 = vmatpush3.bf16.msra.mxu1 %v3582_v4 }
 0x331   : > { %3289 = vmatpush3.bf16.msra.mxu0 %v3583_v5  ;;  %3170 = vmatprep.subr.bf16.mxu1 %v3584_v6 }
 0x332   : > { %3290 = vmatprep.subr.bf16.mxu0 %v3902_v0 }
 0x334   : > { %3171 = vmatpush3.bf16.msra.mxu1 %v3585_v8 }
 0x335   : > { %3291 = vmatpush3.bf16.msra.mxu0 %v3586_v9  ;;  %3172 = vmatprep.subr.bf16.mxu1 %v3587_v10  ;;  %v2957_v9 = vld [vmem:[%s4486_s9] ss:$0 sm:$0xff] }
 0x336   : > { %3292 = vmatprep.subr.bf16.mxu0 %v3902_v0 }
 0x338   : > { %3173 = vmatpush3.bf16.msra.mxu1 %v3588_v7 }
 0x339   : > { %3293 = vmatpush3.bf16.msra.mxu0 %v3589_v11  ;;  %3174 = vmatprep.subr.bf16.mxu1 %v3590_v12 }
 0x33a   : > { %3294 = vmatprep.subr.bf16.mxu0 %v3902_v0 }
 0x33c   : > { %3175 = vmatpush3.bf16.msra.mxu1 %v3591_v13 }
 0x33d   : > { %3295 = vmatpush3.bf16.msra.mxu0 %v3592_v14  ;;  %3176 = vmatprep.subr.bf16.mxu1 %v3593_v15 }
 0x33e   : > { %3296 = vmatprep.subr.bf16.mxu0 %v3902_v0 }
 0x340   : > { %3177 = vmatpush3.bf16.msra.mxu1 %v3594_v16 }
 0x341   : > { %3297 = vmatpush3.bf16.msra.mxu0 %v3595_v17  ;;  %3302 = vmatprep.subr.bf16.mxu1 %v3902_v0 }
 0x343   : > { %2404 = vmatmul.mubr.bf16.vlgmr.msra.gmra.mrb[20].mxu1 %v4337_v32 }
 0x344   : > { %3299 = vmatmul.mubr.bf16.vlgmr.msra.gmra.mrb[24].mxu0 %v1552_v60  ;;  %3318 = vmatprep.mubr.msk.bf16.mxu1 %vm3903_vm0, %v3902_v0 }
 0x345   : > { %3303 = vmatpush3.bf16.msra.mxu1 %v3596_v18 }
 0x346   : > { %3304 = vmatprep.subr.bf16.mxu1 %v3902_v0 }
 0x349   : > { %3305 = vmatpush3.bf16.msra.mxu1 %v3597_v20 }
 0x34a   : > { %3306 = vmatprep.subr.bf16.mxu1 %v3902_v0 }
 0x34d   : > { %3307 = vmatpush3.bf16.msra.mxu1 %v3598_v22 }
 0x34e   : > { %3308 = vmatprep.subr.bf16.mxu1 %v3902_v0 }
 0x351   : > { %3309 = vmatpush3.bf16.msra.mxu1 %v3599_v23 }
 0x352   : > { %3310 = vmatprep.subr.bf16.mxu1 %v3902_v0 }
 0x355   : > { %3311 = vmatpush3.bf16.msra.mxu1 %v3600_v24 }
 0x356   : > { %3312 = vmatprep.subr.bf16.mxu1 %v3902_v0 }
 0x359   : > { %3313 = vmatpush3.bf16.msra.mxu1 %v3601_v25 }
 0x35a   : > { %3314 = vmatprep.subr.bf16.mxu1 %v3902_v0 }
 0x35d   : > { %3315 = vmatpush3.bf16.msra.mxu1 %v3602_v52 }
 0x35e   : > { %3316 = vmatprep.subr.bf16.mxu1 %v3902_v0 }
 0x361   : > { %3317 = vmatpush3.bf16.msra.mxu1 %v3603_v26 }
 0x3d6   : > { %v3103_v27 = vpop.f32.mrb[12].mxu1  ;;  %v3125_v28 = vpop.f32.mrb[16].mxu0 }
 0x3d7   : > { %v3104_v31 = vpop.f32.mrb[13].mxu1  ;;  %v3126_v32 = vpop.f32.mrb[17].mxu0 }
 0x3d8   : > { %v3105_v54 = vadd.f32 %v3104_v31, %v3103_v27  ;;  %v3127_v55 = vadd.f32 %v3126_v32, %v3125_v28  ;;  %v3106_v56 = vpop.f32.mrb[14].mxu1  ;;  %v3128_v33 = vpop.f32.mrb[18].mxu0 }
 0x3d9   : > { %v3107_v34 = vpop.f32.mrb[15].mxu1  ;;  %v3129_v35 = vpop.f32.mrb[19].mxu0 }
 0x3da   : > { %v1917_v36 = vadd.f32 %v3105_v54, %v2873_v30 }
 0x3dc   : > { %v1957_v37 = vadd.f32 %v3127_v55, %v1917_v36 }
 0x3f6   : > { %v1996_v38 = vpop.f32.mrb[16].mxu1  ;;  %v3156_v39 = vpop.f32.mrb[20].mxu0 }
 0x3f7   : > { %v1997_v0 = vadd.f32 %v1996_v38, %v1957_v37  ;;  %v3280_v40 = vpop.f32.mrb[17].mxu1  ;;  %v3157_v41 = vpop.f32.mrb[21].mxu0 }
 0x3f8   : > { %v3158_v42 = vadd.f32 %v3157_v41, %v3156_v39  ;;  %v1999_v43 = vpop.f32.mrb[18].mxu1  ;;  %v3159_v44 = vpop.f32.mrb[22].mxu0 }
 0x3f9   : > { %v3281_v45 = vpop.f32.mrb[19].mxu1  ;;  %v3160_v46 = vpop.f32.mrb[23].mxu0 }
 0x3fa   : > { %v2366_v53 = vadd.f32 %v3158_v42, %v2915_v47 }
 0x416   : > { %v3178_v48 = vpop.f32.mrb[20].mxu1 }
 0x417   : > { %v2445_v49 = vpop.f32.mrb[24].mxu0  ;;  %v3179_v51 = vpop.f32.mrb[21].mxu1 }
 0x418   : > { %v3180_v57 = vadd.f32 %v3179_v51, %v3178_v48  ;;  %v3300_v58 = vpop.f32.mrb[25].mxu0  ;;  %v3181_v59 = vpop.f32.mrb[22].mxu1 }
 0x419   : > { %v2448_v60 = vpop.f32.mrb[26].mxu0  ;;  %v3182_v61 = vpop.f32.mrb[23].mxu1 }
 0x41a   : > { %v2406_v62 = vadd.f32 %v3180_v57, %v2366_v53  ;;  %v3301_v63 = vpop.f32.mrb[27].mxu0 }
 0x41c   : > { %v2446_v50 = vadd.f32 %v2445_v49, %v2406_v62 }
 0x41e   : > { %v2956_v29 = vmul.f32 -1.442695, %v2446_v50 }
 0x420   : > { %3608 = vpow2.f32 %v2956_v29 }
 0x42a   : > { %v3609_v1 = vpop.eup %3608 }
 0x42b   : > { %v2454_v2 = vadd.f32 1.0, %v3609_v1 }
 0x42d   : > { %3610 = vrcp.f32 %v2454_v2 }
 0x437   : > { %v3611_v3 = vpop.eup %3610 }
 0x438   : > { %v2457_v4 = vmul.f32 %v3611_v3, %v1997_v0 }
 0x43a   : > { %v2458_v5 = vadd.f32 %v2457_v4, %v4317_v19 }
 0x43c   : > { %v2459_v6 = vmul.f32 0.70710677, %v2458_v5 }
 0x43e   : > { %v2462_v8 = vpack.c.bf16 %v2459_v6, %v2459_v6 }
 0x440   : > { %3319 = vmatmul.mubr.bf16.vlgmr.msra.gmra.mrb[24].mxu1 %v2462_v8 }
 0x513   : > { %v2568_v10 = vpop.f32.mrb[24].mxu1 }
 0x514   : > { %v2569_v7 = vadd.f32 %v2957_v9, %v2568_v10  ;;  %v3320_v11 = vpop.f32.mrb[25].mxu1 }
 0x515   : > { %v2571_v19 = vpop.f32.mrb[26].mxu1 }
 0x516   : > { %2574 = vst [vmem:[%s476_s13] sm:$0xff] %v2569_v7  ;;  %v2576_v12 = vadd.f32 %v2569_v7, %v4231_v21  ;;  %v3321_v13 = vpop.f32.mrb[27].mxu1 }
 0x517   : > { %3795 = shalt.err (!%p3792_p9)
}
 0x518   : > { %s3796_s25 = scalar_lea.hbm %s4395_s11, 128  ;;  %s3800_s22 = scalar_lea.hbm %s4516_s27, 256 }
 0x519   : > { %p3797_p6 = scmp.ne.s32.totalorder %s4395_s11, %s3796_s25  ;;  %p3801_p8 = scmp.lt.u32.totalorder %s4395_s11, %s4516_s27 }
 0x51a   : > { %p3802_p10 = scmp.lt.u32.totalorder %s3800_s22, %s3796_s25  ;;  %p3804_p11 = scmp.lt.u32.totalorder %s3796_s25, %s4395_s11 }
 0x51b   : > { %p3798_p0 = pnand %p3797_p6, %p4517_p13 }
 0x51c   : > { %p3803_p12 = por %p3802_p10, %p3801_p8 }
 0x51d   : > { %p3799_p2 = pneg %p3798_p0 }
 0x51e   : > { %p3805_p5 = por %p3804_p11, %p3803_p12 }
 0x520   : > { %p3806_p7 = pnand %p3805_p5, %p3799_p2 }
 0x522   : > { %3809 = shalt.err (!%p3806_p7)
}
 0x523   : > { %3344 = dma.vmem_to_hbm [thread:$0]  (%p4517_p13), %s4397_s26, 128, %s4395_s11, %s2580_s15   ;;  %v2577_v21 = vmul.f32 0.70710677, %v2576_v12 }
 0x524   : > { %s4518_s10 = sshll.u32 %s3987_s23, 7  ;;  %s4519_s29 = sld [smem:[#allocation27_spill]] }
 0x525   : > { %s4520_s25 = sshll.u32 %s4399_s1, 4  ;;  %2578 = vst [vmem:[%s4399_s1] sm:$0xff] %v2577_v21  ;;  %s2585_s22 = scalar_lea.sflag [#allocation17], %s4199_s4  ;;  %s4434_s25 = int_to_ptr.vmem [resolvable:$true] %s4520_s25 }
 0x526   : > { %s3810_s14 = scalar_lea.vmem %s4434_s25, 128  ;;  %s3905_s26 = smov [#allocation16]  }
 0x527   : > { %p3811_p4 = scmp.ne.s32.totalorder %s4434_s25, %s3810_s14  ;;  %s3814_s23 = sshll.u32 %s3905_s26, 4  ;;  %s3815_s23 = int_to_ptr.vmem [resolvable:$false] %s3814_s23 }
 0x528   : > { %s3816_s11 = scalar_lea.vmem %s3815_s23, 256  ;;  %p3817_p9 = scmp.lt.s32.totalorder %s4434_s25, %s3815_s23 }
 0x529   : > { %p3812_p1 = pnand %p3811_p4, %p4517_p13  ;;  %p3818_p6 = scmp.lt.s32.totalorder %s3816_s11, %s3810_s14 }
 0x52a   : > { %s4430_s13 = scalar_lea.hbm %s4519_s29, %s4518_s10 }
 0x52b   : > { %p3813_p3 = pneg %p3812_p1  ;;  %p3819_p0 = por %p3818_p6, %p3817_p9 }
 0x52d   : > { %p3820_p2 = pnand %p3819_p0, %p3813_p3 }
 0x52f   : > { %3823 = shalt.err (!%p3820_p2)
}
 0x530   : > { %s3824_s4 = scalar_lea.hbm %s4430_s13, 128  ;;  %s3828_s10 = scalar_lea.hbm %s4519_s29, 256 }
 0x531   : > { %p3825_p8 = scmp.ne.s32.totalorder %s4430_s13, %s3824_s4  ;;  %p3829_p11 = scmp.lt.u32.totalorder %s4430_s13, %s4519_s29 }
 0x532   : > { %p3830_p5 = scmp.lt.u32.totalorder %s3828_s10, %s3824_s4  ;;  %p3832_p4 = scmp.lt.u32.totalorder %s3824_s4, %s4430_s13 }
 0x533   : > { %p3826_p10 = pnand %p3825_p8, %p4517_p13 }
 0x534   : > { %p3831_p7 = por %p3830_p5, %p3829_p11 }
 0x535   : > { %p3827_p12 = pneg %p3826_p10 }
 0x536   : > { %p3833_p1 = por %p3832_p4, %p3831_p7 }
 0x538   : > { %p3834_p3 = pnand %p3833_p1, %p3827_p12 }
 0x53a   : > { %3837 = shalt.err (!%p3834_p3)
}
 0x53b   : > { %3345 = dma.vmem_to_hbm [thread:$0]  (%p4517_p13), %s4434_s25, 128, %s4430_s13, %s2585_s22  }
 0x53c PF: > { %s2623_s14 = sand.u32 1, %s3880_s17   ;;  %p4521_p9 = scmp.ne.s32.totalorder %s4507_s21, 0 }
 0x53d   : > { %p4522_p6 = scmp.ge.s32.totalorder %s3892_s20, 2  ;;  %s2624_s26 = scalar_lea.sflag [#allocation6], %s2623_s14 }
 0x53f   : > { %p3369_p0 = pnand %p4522_p6, %p4521_p9 }
 0x541   : > { %3871 = dma.done.wait (!%p3369_p0), %s2624_s26, 128  }
 0x542   : > { %3873 = vsyncadd (!%p3369_p0), %s2624_s26, 4294967168  ;;  %s2633_s23 = scalar_lea.sflag [#allocation17], %s2623_s14 }
 0x543   : > { %3875 = dma.done.wait (!%p3369_p0), %s2633_s23, 128  }
 0x544   : > { %3877 = vsyncadd (!%p3369_p0), %s2633_s23, 4294967168  ;;  %p31_p13 = scmp.ge.s32.totalorder %s4129_s16, 4   ;;  %s4523_s17 = smov %s3884_s18 }
 0x545   : > { %s4524_s18 = smov %s3888_s19  ;;  %s4525_s19 = smov %s4141_s12 }
 0x546   : > { %s4526_s20 = smov %s4129_s16  ;;  %33 = sbr.rel (!%p31_p13) target bundleno = 15 (0xf), region = 146 }
 0x54d   :  { %2638 = vsyncpa [#allocation5], 1 }
 0x54e   :  { %2640 = vsyncpa [#allocation5 + $0x1], 1 }
 0x54f   :  { %2641 = vsyncpa [#allocation8], 1 }
 0x550   :  { %2642 = vsyncpa [#allocation11], 1 }
 0x551   :  { %2643 = vsyncpa [#allocation14], 1 }
 0x552   :  { %2644 = vsyncpa [#allocation6], 1 }
 0x553   :  { %2646 = vsyncpa [#allocation6 + $0x1], 1 }
 0x554   :  { %2647 = vsyncpa [#allocation17], 1 }
 0x555   :  { %2649 = vsyncpa [#allocation17 + $0x1], 1 }

</bundles_post_ra>
